<compile_context>
chip_gen: v7x
topology: tpu7x:2x2x1
jax: 0.10.0
libtpu: 0.0.40
codegen_flags: <defaults>
</compile_context>

<pallas_src>
import functools

import jax
import jax.numpy as jnp
from jax import lax
from jax.experimental import pallas as pl
from jax.experimental.pallas import tpu as pltpu

_MASK_VALUE = -1e30  # finite "-inf": NaN-safe even for fully-masked rows/blocks.


def _flash_mha_kernel(x_q_ref, x_kv_ref, w_ref, o_ref,
                      q_scr, k_scr, v_scr, m_scr, l_scr, acc_scr,
                      *, heads, head_dim, tq, tk):
    """One (batch, q-tile, kv-tile) grid step of causal multi-head attention.

    x_q_ref  : (1, tq, D)    query-row tile of the input
    x_kv_ref : (1, tk, D)    key/value-row tile of the input
    w_ref    : (D, 3*H*D)    stacked bf16 [Wq/sqrt(D) | Wk | Wv], head-major columns
    o_ref    : (1, tq, H*D)  output tile (lane-dense last dim)
    scratch  : q (H,tq,D) bf16 | k,v (H,tk,D) bf16 | m,l (H,tq,1) f32 | acc (H,tq,D) f32
    """
    H, D = heads, head_dim
    HD = H * D
    qi = pl.program_id(1)
    ki = pl.program_id(2)

    @pl.when(ki == 0)
    def _init():
        # Project Q for this tile once (scale pre-folded into Wq columns) and keep
        # it resident, head-major, across the whole KV loop.
        xq = x_q_ref[0].astype(jnp.bfloat16)                              # (tq, D)
        q2 = jnp.dot(xq, w_ref[:, :HD],
                     preferred_element_type=jnp.float32).astype(jnp.bfloat16)
        for h in range(H):   # one-time relayout: lane slices -> head-major scratch
            q_scr[h] = q2[:, h * D:(h + 1) * D]
        m_scr[...] = jnp.full((H, tq, 1), _MASK_VALUE, jnp.float32)
        l_scr[...] = jnp.zeros((H, tq, 1), jnp.float32)
        acc_scr[...] = jnp.zeros((H, tq, D), jnp.float32)

    # Causal block skip: KV tiles strictly after this Q tile contribute nothing.
    @pl.when(ki <= qi)
    def _compute():
        # Fused K|V projection for this KV tile (one lane-dense MXU stream).
        xkv = x_kv_ref[0].astype(jnp.bfloat16)                            # (tk, D)
        kv2 = jnp.dot(xkv, w_ref[:, HD:],
                      preferred_element_type=jnp.float32).astype(jnp.bfloat16)
        for h in range(H):
            k_scr[h] = kv2[:, h * D:(h + 1) * D]
            v_scr[h] = kv2[:, HD + h * D:HD + (h + 1) * D]

        # Head-batched QK^T: (H, tq, D) x (H, tk, D) -> (H, tq, tk), f32 accumulate.
        s = lax.dot_general(q_scr[...], k_scr[...],
                            (((2,), (2,)), ((0,), (0,))),
                            preferred_element_type=jnp.float32)

        # Causal mask inside the (diagonal) block: torch.triu(..., diagonal=1).
        row = qi * tq + lax.broadcasted_iota(jnp.int32, (tq, tk), 0)
        col = ki * tk + lax.broadcasted_iota(jnp.int32, (tq, tk), 1)
        s = jnp.where((col > row)[None, :, :], _MASK_VALUE, s)

        # Online-softmax update.
        m_prev = m_scr[...]
        m_new = jnp.maximum(m_prev, jnp.max(s, axis=-1, keepdims=True))
        alpha = jnp.exp(m_prev - m_new)
        p = jnp.exp(s - m_new)
        l_scr[...] = alpha * l_scr[...] + jnp.sum(p, axis=-1, keepdims=True)
        # Head-batched P@V on the bf16 MXU path, f32 accumulation.
        pv = lax.dot_general(p.astype(jnp.bfloat16), v_scr[...],
                             (((2,), (1,)), ((0,), (0,))),
                             preferred_element_type=jnp.float32)          # (H, tq, D)
        acc_scr[...] = alpha * acc_scr[...] + pv
        m_scr[...] = m_new
        # TODO(synk): attention dropout omitted (rate = 0.0 / eval-mode identity).

    @pl.when(ki == pl.num_programs(2) - 1)
    def _finalize():
        # Softmax normalisation on the EUP (approximate reciprocal, free slot).
        out = acc_scr[...] * pl.reciprocal(l_scr[...], approx=True)       # (H, tq, D)
        # Stream each head into its lane slice; the HBM writeback of this block is
        # still a single lane-dense (tq, H*D) store.
        for h in range(H):
            o_ref[0, :, h * D:(h + 1) * D] = out[h].astype(o_ref.dtype)


def _build_call(B, T, D, H, tq, tk, out_dtype, weight_pipeline_mode):
    HD = H * D
    num_q = T // tq
    num_k = T // tk

    kernel = functools.partial(_flash_mha_kernel, heads=H, head_dim=D, tq=tq, tk=tk)

    w_spec_kwargs = {}
    if weight_pipeline_mode is not None:
        w_spec_kwargs = dict(pipeline_mode=weight_pipeline_mode)

    return pl.pallas_call(
        kernel,
        out_shape=jax.ShapeDtypeStruct((B, T, HD), out_dtype),
        grid_spec=pltpu.PrefetchScalarGridSpec(
            num_scalar_prefetch=0,
            grid=(B, num_q, num_k),                        # KV (reduction) axis last
            in_specs=[
                pl.BlockSpec((1, tq, D), lambda b, qi, ki: (b, qi, 0)),   # Q rows
                pl.BlockSpec((1, tk, D), lambda b, qi, ki: (b, ki, 0)),   # K/V rows
                pl.BlockSpec((D, 3 * HD), lambda b, qi, ki: (0, 0),       # resident weights
                             **w_spec_kwargs),
            ],
            out_specs=pl.BlockSpec((1, tq, HD), lambda b, qi, ki: (b, qi, 0)),
            scratch_shapes=[
                pltpu.VMEM((H, tq, D), jnp.bfloat16),      # q (head-major, resident over KV)
                pltpu.VMEM((H, tk, D), jnp.bfloat16),      # k
                pltpu.VMEM((H, tk, D), jnp.bfloat16),      # v
                pltpu.VMEM((H, tq, 1), jnp.float32),       # m (running max)
                pltpu.VMEM((H, tq, 1), jnp.float32),       # l (running denominator)
                pltpu.VMEM((H, tq, D), jnp.float32),       # acc (running numerator)
            ],
        ),
        compiler_params=pltpu.CompilerParams(
            # B and Q tiles are independent -> both parallel (keeps both v7x TCs busy
            # even at B == 1); KV is the in-order reduction axis.
            dimension_semantics=("parallel", "parallel", "arbitrary"),
            # Explicit VMEM budget: safe on every chip (v7x physical VMEM is 64 MiB,
            # v5e's default scoped limit is only 16 MiB).
            vmem_limit_bytes=32 * 1024 * 1024,
        ),
    )


def multi_head_causal_attention(x, wq, wk, wv, *, block_q=128):
    """x: (B, T, D); wq/wk/wv: (H, D, D) applied as x @ W[h]. Returns (B, T, H*D)."""
    B, T, D = x.shape
    H = wq.shape[0]
    HD = H * D

    tq = min(block_q, T)
    tk = tq                 # equal tiles keep the causal block-skip (ki <= qi) exact
    assert T % tq == 0, "sequence length must be a multiple of the Q/KV tile"

    # Stack per-head weights head-major into one (D, 3*H*D) bf16 matrix
    # [Wq_h0..Wq_hH-1 | Wk_* | Wv_*]; the 1/sqrt(D) softmax scale is folded into
    # the Wq columns (one-time cost — weights are resident across the grid).
    def _stack(w):
        return jnp.transpose(w, (1, 0, 2)).reshape(D, HD)

    scale = 1.0 / (D ** 0.5)
    w_qkv = jnp.concatenate(
        [_stack(wq) * scale, _stack(wk), _stack(wv)], axis=1).astype(jnp.bfloat16)

    # TODO(synk): for long sequences the K/V projection is recomputed once per Q
    # tile; hoist it into a separate pallas_call producing a (B, T, 3*H*D)
    # intermediate when T >> block_q.

    try:
        # Single-buffered resident weights (constant index_map -> the second
        # pipeline buffer is pure VMEM waste).
        call = _build_call(B, T, D, H, tq, tk, x.dtype, pl.Buffered(1))
        return call(x, x, w_qkv)
    except Exception:
        # Fallback for JAX builds whose Mosaic lowering rejects pipeline_mode /
        # Buffered(1): default double-buffering (correctness identical).
        call = _build_call(B, T, D, H, tq, tk, x.dtype, None)
        return call(x, x, w_qkv)


def _reference(x, wq, wk, wv):
    """Pure-JAX f32 reference matching the PyTorch forward (dropout = identity)."""
    B, T, D = x.shape
    mask = jnp.triu(jnp.ones((T, T), dtype=bool), k=1)
    outs = []
    for h in range(wq.shape[0]):
        q = x @ wq[h]
        k = x @ wk[h]
        v = x @ wv[h]
        s = jnp.einsum("btd,bsd->bts", q, k) / jnp.sqrt(jnp.float32(D))
        s = jnp.where(mask[None], -jnp.inf, s)
        p = jax.nn.softmax(s, axis=-1)
        outs.append(p @ v)
    return jnp.concatenate(outs, axis=-1)


if __name__ == "__main__":
    # Small shapes consistent with the module.
    numberOfHeads = 4
    embeddingDimension = 32
    contextLength = 8
    batch = 2
    H, D, T = numberOfHeads, embeddingDimension, contextLength

    key = jax.random.PRNGKey(0)
    kx, kq, kk, kv, kx2 = jax.random.split(key, 5)
    x = jax.random.normal(kx, (batch, T, D), dtype=jnp.float32)
    # Deterministic per-head projection weights (qkvBias=False -> no biases).
    wq = jax.random.normal(kq, (H, D, D), dtype=jnp.float32) * 0.05
    wk = jax.random.normal(kk, (H, D, D), dtype=jnp.float32) * 0.05
    wv = jax.random.normal(kv, (H, D, D), dtype=jnp.float32) * 0.05

    out = multi_head_causal_attention(x, wq, wk, wv)
    out = jax.block_until_ready(out)
    ref = _reference(x, wq, wk, wv)
    assert out.shape == (batch, T, H * D), out.shape
    # Tolerance covers bf16 MXU operands (f32 accumulation) + the EUP
    # approximate-reciprocal softmax normalisation.
    assert jnp.allclose(out, ref, atol=1e-2, rtol=1e-2), "mismatch vs reference"

    # Second configuration (contextLength = 16, tile = 8) to exercise the blocked
    # flash path: multiple Q tiles, multiple KV tiles, causal block skipping.
    T2 = 16
    x2 = jax.random.normal(kx2, (batch, T2, D), dtype=jnp.float32)
    out2 = jax.block_until_ready(
        multi_head_causal_attention(x2, wq, wk, wv, block_q=8))
    ref2 = _reference(x2, wq, wk, wv)
    assert out2.shape == (batch, T2, H * D), out2.shape
    assert jnp.allclose(out2, ref2, atol=1e-2, rtol=1e-2), "mismatch (blocked path)"

    print("KERNEL_OK")
</pallas_src>

<mosaic_0001>
module attributes {stable_mosaic.version = 11 : i64} {
  func.func @_flash_mha_kernel(%arg0: i32, %arg1: i32, %arg2: i32, %arg3: memref<1x8x32xf32, #tpu.memory_space<vmem>>, %arg4: memref<1x8x32xf32, #tpu.memory_space<vmem>>, %arg5: memref<32x384xbf16, #tpu.memory_space<vmem>>, %arg6: memref<1x8x128xf32, #tpu.memory_space<vmem>>, %arg7: memref<4x8x32xbf16, #tpu.memory_space<vmem>>, %arg8: memref<4x8x32xbf16, #tpu.memory_space<vmem>>, %arg9: memref<4x8x32xbf16, #tpu.memory_space<vmem>>, %arg10: memref<4x8x1xf32, #tpu.memory_space<vmem>>, %arg11: memref<4x8x1xf32, #tpu.memory_space<vmem>>, %arg12: memref<4x8x32xf32, #tpu.memory_space<vmem>>) attributes {dimension_semantics = [#tpu.dimension_semantics<parallel>, #tpu.dimension_semantics<parallel>, #tpu.dimension_semantics<arbitrary>], iteration_bounds = array<i64: 2, 1, 1>, scalar_prefetch = 0 : i64, scratch_operands = 6 : i64, tpu.core_type = #tpu.core_type<tc>, window_params = [{transform_indices = @transform_0, window_bounds = array<i64: 1, 8, 32>}, {transform_indices = @transform_1, window_bounds = array<i64: 1, 8, 32>}, {pipeline_mode = #tpu.pipeline_mode<synchronous>, transform_indices = @transform_2, window_bounds = array<i64: 32, 384>}, {transform_indices = @transform_3, window_bounds = array<i64: 1, 8, 128>}]} {
    %c0_i32 = arith.constant 0 : i32
    %0 = arith.cmpi eq, %arg2, %c0_i32 : i32
    %1 = arith.extui %0 : i1 to i32
    %c0_i32_0 = arith.constant 0 : i32
    %2 = arith.cmpi ne, %1, %c0_i32_0 : i32
    scf.if %2 {
      %c0 = arith.constant 0 : index
      %c0_4 = arith.constant 0 : index
      %c0_5 = arith.constant 0 : index
      %9 = vector.load %arg3[%c0, %c0_4, %c0_5] : memref<1x8x32xf32, #tpu.memory_space<vmem>>, vector<1x8x32xf32>
      %10 = vector.shape_cast %9 : vector<1x8x32xf32> to vector<8x32xf32>
      %11 = arith.truncf %10 : vector<8x32xf32> to vector<8x32xbf16>
      %c0_6 = arith.constant 0 : index
      %c0_7 = arith.constant 0 : index
      %12 = vector.load %arg5[%c0_6, %c0_7] : memref<32x384xbf16, #tpu.memory_space<vmem>>, vector<32x128xbf16>
      %cst = arith.constant dense<0.000000e+00> : vector<8x128xf32>
      %13 = tpu.matmul %11, %12, %cst {dimension_numbers = #tpu.dot_dimension_numbers<[1], [0], [0], [1], [0, 0, 1, 1], [], []>} : vector<8x32xbf16>, vector<32x128xbf16>, vector<8x128xf32> -> vector<8x128xf32>
      %14 = arith.truncf %13 : vector<8x128xf32> to vector<8x128xbf16>
      %15 = vector.extract_strided_slice %14 {offsets = [0, 0], sizes = [8, 32], strides = [1, 1]} : vector<8x128xbf16> to vector<8x32xbf16>
      %c0_8 = arith.constant 0 : index
      %c0_9 = arith.constant 0 : index
      %c0_10 = arith.constant 0 : index
      %16 = vector.load %arg7[%c0_8, %c0_9, %c0_10] : memref<4x8x32xbf16, #tpu.memory_space<vmem>>, vector<1x8x32xbf16>
      %17 = vector.shape_cast %16 : vector<1x8x32xbf16> to vector<8x32xbf16>
      %18 = vector.shape_cast %15 : vector<8x32xbf16> to vector<1x8x32xbf16>
      tpu.vector_store %arg7[%c0_8, %c0_9, %c0_10], %18 {strides = array<i32>} : memref<4x8x32xbf16, #tpu.memory_space<vmem>>, vector<1x8x32xbf16>,
      %19 = vector.extract_strided_slice %14 {offsets = [0, 32], sizes = [8, 32], strides = [1, 1]} : vector<8x128xbf16> to vector<8x32xbf16>
      %c1 = arith.constant 1 : index
      %c0_11 = arith.constant 0 : index
      %c0_12 = arith.constant 0 : index
      %20 = vector.load %arg7[%c1, %c0_11, %c0_12] : memref<4x8x32xbf16, #tpu.memory_space<vmem>>, vector<1x8x32xbf16>
      %21 = vector.shape_cast %20 : vector<1x8x32xbf16> to vector<8x32xbf16>
      %22 = vector.shape_cast %19 : vector<8x32xbf16> to vector<1x8x32xbf16>
      tpu.vector_store %arg7[%c1, %c0_11, %c0_12], %22 {strides = array<i32>} : memref<4x8x32xbf16, #tpu.memory_space<vmem>>, vector<1x8x32xbf16>,
      %23 = vector.extract_strided_slice %14 {offsets = [0, 64], sizes = [8, 32], strides = [1, 1]} : vector<8x128xbf16> to vector<8x32xbf16>
      %c2 = arith.constant 2 : index
      %c0_13 = arith.constant 0 : index
      %c0_14 = arith.constant 0 : index
      %24 = vector.load %arg7[%c2, %c0_13, %c0_14] : memref<4x8x32xbf16, #tpu.memory_space<vmem>>, vector<1x8x32xbf16>
      %25 = vector.shape_cast %24 : vector<1x8x32xbf16> to vector<8x32xbf16>
      %26 = vector.shape_cast %23 : vector<8x32xbf16> to vector<1x8x32xbf16>
      tpu.vector_store %arg7[%c2, %c0_13, %c0_14], %26 {strides = array<i32>} : memref<4x8x32xbf16, #tpu.memory_space<vmem>>, vector<1x8x32xbf16>,
      %27 = vector.extract_strided_slice %14 {offsets = [0, 96], sizes = [8, 32], strides = [1, 1]} : vector<8x128xbf16> to vector<8x32xbf16>
      %c3 = arith.constant 3 : index
      %c0_15 = arith.constant 0 : index
      %c0_16 = arith.constant 0 : index
      %28 = vector.load %arg7[%c3, %c0_15, %c0_16] : memref<4x8x32xbf16, #tpu.memory_space<vmem>>, vector<1x8x32xbf16>
      %29 = vector.shape_cast %28 : vector<1x8x32xbf16> to vector<8x32xbf16>
      %30 = vector.shape_cast %27 : vector<8x32xbf16> to vector<1x8x32xbf16>
      tpu.vector_store %arg7[%c3, %c0_15, %c0_16], %30 {strides = array<i32>} : memref<4x8x32xbf16, #tpu.memory_space<vmem>>, vector<1x8x32xbf16>,
      %cst_17 = arith.constant -1.000000e+30 : f32
      %31 = vector.broadcast %cst_17 : f32 to vector<4x8x1xf32>
      %c0_18 = arith.constant 0 : index
      %c0_19 = arith.constant 0 : index
      %c0_20 = arith.constant 0 : index
      %32 = vector.load %arg10[%c0_18, %c0_19, %c0_20] : memref<4x8x1xf32, #tpu.memory_space<vmem>>, vector<4x8x1xf32>
      tpu.vector_store %arg10[%c0_18, %c0_19, %c0_20], %31 {strides = array<i32>} : memref<4x8x1xf32, #tpu.memory_space<vmem>>, vector<4x8x1xf32>,
      %cst_21 = arith.constant 0.000000e+00 : f32
      %33 = vector.broadcast %cst_21 : f32 to vector<4x8x1xf32>
      %c0_22 = arith.constant 0 : index
      %c0_23 = arith.constant 0 : index
      %c0_24 = arith.constant 0 : index
      %34 = vector.load %arg11[%c0_22, %c0_23, %c0_24] : memref<4x8x1xf32, #tpu.memory_space<vmem>>, vector<4x8x1xf32>
      tpu.vector_store %arg11[%c0_22, %c0_23, %c0_24], %33 {strides = array<i32>} : memref<4x8x1xf32, #tpu.memory_space<vmem>>, vector<4x8x1xf32>,
      %cst_25 = arith.constant 0.000000e+00 : f32
      %35 = vector.broadcast %cst_25 : f32 to vector<4x8x32xf32>
      %c0_26 = arith.constant 0 : index
      %c0_27 = arith.constant 0 : index
      %c0_28 = arith.constant 0 : index
      %36 = vector.load %arg12[%c0_26, %c0_27, %c0_28] : memref<4x8x32xf32, #tpu.memory_space<vmem>>, vector<4x8x32xf32>
      tpu.vector_store %arg12[%c0_26, %c0_27, %c0_28], %35 {strides = array<i32>} : memref<4x8x32xf32, #tpu.memory_space<vmem>>, vector<4x8x32xf32>,
    } else {
    }
    %3 = arith.cmpi sle, %arg2, %arg1 : i32
    %4 = arith.extui %3 : i1 to i32
    %c0_i32_1 = arith.constant 0 : i32
    %5 = arith.cmpi ne, %4, %c0_i32_1 : i32
    scf.if %5 {
      %c0 = arith.constant 0 : index
      %c0_4 = arith.constant 0 : index
      %c0_5 = arith.constant 0 : index
      %9 = vector.load %arg4[%c0, %c0_4, %c0_5] : memref<1x8x32xf32, #tpu.memory_space<vmem>>, vector<1x8x32xf32>
      %10 = vector.shape_cast %9 : vector<1x8x32xf32> to vector<8x32xf32>
      %11 = arith.truncf %10 : vector<8x32xf32> to vector<8x32xbf16>
      %c0_6 = arith.constant 0 : index
      %c128 = arith.constant 128 : index
      %12 = vector.load %arg5[%c0_6, %c128] : memref<32x384xbf16, #tpu.memory_space<vmem>>, vector<32x256xbf16>
      %cst = arith.constant dense<0.000000e+00> : vector<8x256xf32>
      %13 = tpu.matmul %11, %12, %cst {dimension_numbers = #tpu.dot_dimension_numbers<[1], [0], [0], [1], [0, 0, 1, 1], [], []>} : vector<8x32xbf16>, vector<32x256xbf16>, vector<8x256xf32> -> vector<8x256xf32>
      %14 = arith.truncf %13 : vector<8x256xf32> to vector<8x256xbf16>
      %15 = vector.extract_strided_slice %14 {offsets = [0, 0], sizes = [8, 32], strides = [1, 1]} : vector<8x256xbf16> to vector<8x32xbf16>
      %c0_7 = arith.constant 0 : index
      %c0_8 = arith.constant 0 : index
      %c0_9 = arith.constant 0 : index
      %16 = vector.load %arg8[%c0_7, %c0_8, %c0_9] : memref<4x8x32xbf16, #tpu.memory_space<vmem>>, vector<1x8x32xbf16>
      %17 = vector.shape_cast %16 : vector<1x8x32xbf16> to vector<8x32xbf16>
      %18 = vector.shape_cast %15 : vector<8x32xbf16> to vector<1x8x32xbf16>
      tpu.vector_store %arg8[%c0_7, %c0_8, %c0_9], %18 {strides = array<i32>} : memref<4x8x32xbf16, #tpu.memory_space<vmem>>, vector<1x8x32xbf16>,
      %19 = vector.extract_strided_slice %14 {offsets = [0, 128], sizes = [8, 32], strides = [1, 1]} : vector<8x256xbf16> to vector<8x32xbf16>
      %c0_10 = arith.constant 0 : index
      %c0_11 = arith.constant 0 : index
      %c0_12 = arith.constant 0 : index
      %20 = vector.load %arg9[%c0_10, %c0_11, %c0_12] : memref<4x8x32xbf16, #tpu.memory_space<vmem>>, vector<1x8x32xbf16>
      %21 = vector.shape_cast %20 : vector<1x8x32xbf16> to vector<8x32xbf16>
      %22 = vector.shape_cast %19 : vector<8x32xbf16> to vector<1x8x32xbf16>
      tpu.vector_store %arg9[%c0_10, %c0_11, %c0_12], %22 {strides = array<i32>} : memref<4x8x32xbf16, #tpu.memory_space<vmem>>, vector<1x8x32xbf16>,
      %23 = vector.extract_strided_slice %14 {offsets = [0, 32], sizes = [8, 32], strides = [1, 1]} : vector<8x256xbf16> to vector<8x32xbf16>
      %c1 = arith.constant 1 : index
      %c0_13 = arith.constant 0 : index
      %c0_14 = arith.constant 0 : index
      %24 = vector.load %arg8[%c1, %c0_13, %c0_14] : memref<4x8x32xbf16, #tpu.memory_space<vmem>>, vector<1x8x32xbf16>
      %25 = vector.shape_cast %24 : vector<1x8x32xbf16> to vector<8x32xbf16>
      %26 = vector.shape_cast %23 : vector<8x32xbf16> to vector<1x8x32xbf16>
      tpu.vector_store %arg8[%c1, %c0_13, %c0_14], %26 {strides = array<i32>} : memref<4x8x32xbf16, #tpu.memory_space<vmem>>, vector<1x8x32xbf16>,
      %27 = vector.extract_strided_slice %14 {offsets = [0, 160], sizes = [8, 32], strides = [1, 1]} : vector<8x256xbf16> to vector<8x32xbf16>
      %c1_15 = arith.constant 1 : index
      %c0_16 = arith.constant 0 : index
      %c0_17 = arith.constant 0 : index
      %28 = vector.load %arg9[%c1_15, %c0_16, %c0_17] : memref<4x8x32xbf16, #tpu.memory_space<vmem>>, vector<1x8x32xbf16>
      %29 = vector.shape_cast %28 : vector<1x8x32xbf16> to vector<8x32xbf16>
      %30 = vector.shape_cast %27 : vector<8x32xbf16> to vector<1x8x32xbf16>
      tpu.vector_store %arg9[%c1_15, %c0_16, %c0_17], %30 {strides = array<i32>} : memref<4x8x32xbf16, #tpu.memory_space<vmem>>, vector<1x8x32xbf16>,
      %31 = vector.extract_strided_slice %14 {offsets = [0, 64], sizes = [8, 32], strides = [1, 1]} : vector<8x256xbf16> to vector<8x32xbf16>
      %c2 = arith.constant 2 : index
      %c0_18 = arith.constant 0 : index
      %c0_19 = arith.constant 0 : index
      %32 = vector.load %arg8[%c2, %c0_18, %c0_19] : memref<4x8x32xbf16, #tpu.memory_space<vmem>>, vector<1x8x32xbf16>
      %33 = vector.shape_cast %32 : vector<1x8x32xbf16> to vector<8x32xbf16>
      %34 = vector.shape_cast %31 : vector<8x32xbf16> to vector<1x8x32xbf16>
      tpu.vector_store %arg8[%c2, %c0_18, %c0_19], %34 {strides = array<i32>} : memref<4x8x32xbf16, #tpu.memory_space<vmem>>, vector<1x8x32xbf16>,
      %35 = vector.extract_strided_slice %14 {offsets = [0, 192], sizes = [8, 32], strides = [1, 1]} : vector<8x256xbf16> to vector<8x32xbf16>
      %c2_20 = arith.constant 2 : index
      %c0_21 = arith.constant 0 : index
      %c0_22 = arith.constant 0 : index
      %36 = vector.load %arg9[%c2_20, %c0_21, %c0_22] : memref<4x8x32xbf16, #tpu.memory_space<vmem>>, vector<1x8x32xbf16>
      %37 = vector.shape_cast %36 : vector<1x8x32xbf16> to vector<8x32xbf16>
      %38 = vector.shape_cast %35 : vector<8x32xbf16> to vector<1x8x32xbf16>
      tpu.vector_store %arg9[%c2_20, %c0_21, %c0_22], %38 {strides = array<i32>} : memref<4x8x32xbf16, #tpu.memory_space<vmem>>, vector<1x8x32xbf16>,
      %39 = vector.extract_strided_slice %14 {offsets = [0, 96], sizes = [8, 32], strides = [1, 1]} : vector<8x256xbf16> to vector<8x32xbf16>
      %c3 = arith.constant 3 : index
      %c0_23 = arith.constant 0 : index
      %c0_24 = arith.constant 0 : index
      %40 = vector.load %arg8[%c3, %c0_23, %c0_24] : memref<4x8x32xbf16, #tpu.memory_space<vmem>>, vector<1x8x32xbf16>
      %41 = vector.shape_cast %40 : vector<1x8x32xbf16> to vector<8x32xbf16>
      %42 = vector.shape_cast %39 : vector<8x32xbf16> to vector<1x8x32xbf16>
      tpu.vector_store %arg8[%c3, %c0_23, %c0_24], %42 {strides = array<i32>} : memref<4x8x32xbf16, #tpu.memory_space<vmem>>, vector<1x8x32xbf16>,
      %43 = vector.extract_strided_slice %14 {offsets = [0, 224], sizes = [8, 32], strides = [1, 1]} : vector<8x256xbf16> to vector<8x32xbf16>
      %c3_25 = arith.constant 3 : index
      %c0_26 = arith.constant 0 : index
      %c0_27 = arith.constant 0 : index
      %44 = vector.load %arg9[%c3_25, %c0_26, %c0_27] : memref<4x8x32xbf16, #tpu.memory_space<vmem>>, vector<1x8x32xbf16>
      %45 = vector.shape_cast %44 : vector<1x8x32xbf16> to vector<8x32xbf16>
      %46 = vector.shape_cast %43 : vector<8x32xbf16> to vector<1x8x32xbf16>
      tpu.vector_store %arg9[%c3_25, %c0_26, %c0_27], %46 {strides = array<i32>} : memref<4x8x32xbf16, #tpu.memory_space<vmem>>, vector<1x8x32xbf16>,
      %c0_28 = arith.constant 0 : index
      %c0_29 = arith.constant 0 : index
      %c0_30 = arith.constant 0 : index
      %47 = vector.load %arg7[%c0_28, %c0_29, %c0_30] : memref<4x8x32xbf16, #tpu.memory_space<vmem>>, vector<4x8x32xbf16>
      %c0_31 = arith.constant 0 : index
      %c0_32 = arith.constant 0 : index
      %c0_33 = arith.constant 0 : index
      %48 = vector.load %arg8[%c0_31, %c0_32, %c0_33] : memref<4x8x32xbf16, #tpu.memory_space<vmem>>, vector<4x8x32xbf16>
      %cst_34 = arith.constant dense<0.000000e+00> : vector<4x8x8xf32>
      %49 = tpu.matmul %47, %48, %cst_34 {dimension_numbers = #tpu.dot_dimension_numbers<[2], [2], [1], [1], [0, 0, 0, 1, 1, 1], [0], [0]>} : vector<4x8x32xbf16>, vector<4x8x32xbf16>, vector<4x8x8xf32> -> vector<4x8x8xf32>
      %c8_i32 = arith.constant 8 : i32
      %50 = arith.muli %arg1, %c8_i32 : i32
      %51 = tpu.iota {dimensions = array<i32: 0>} : vector<8x8xi32>
      %52 = vector.broadcast %50 : i32 to vector<8x8xi32>
      %53 = arith.addi %52, %51 : vector<8x8xi32>
      %c8_i32_35 = arith.constant 8 : i32
      %54 = arith.muli %arg2, %c8_i32_35 : i32
      %55 = tpu.iota {dimensions = array<i32: 1>} : vector<8x8xi32>
      %56 = vector.broadcast %54 : i32 to vector<8x8xi32>
      %57 = arith.addi %56, %55 : vector<8x8xi32>
      %58 = arith.cmpi sgt, %57, %53 : vector<8x8xi32>
      %59 = vector.shape_cast %58 : vector<8x8xi1> to vector<1x8x8xi1>
      %cst_36 = arith.constant -1.000000e+30 : f32
      %60 = vector.shape_cast %59 : vector<1x8x8xi1> to vector<1x8x8xi1>
      %61 = vector.broadcast %60 : vector<1x8x8xi1> to vector<4x8x8xi1>
      %62 = vector.broadcast %cst_36 : f32 to vector<4x8x8xf32>
      %63 = arith.select %61, %62, %49 : vector<4x8x8xi1>, vector<4x8x8xf32>
      %c0_37 = arith.constant 0 : index
      %c0_38 = arith.constant 0 : index
      %c0_39 = arith.constant 0 : index
      %64 = vector.load %arg10[%c0_37, %c0_38, %c0_39] : memref<4x8x1xf32, #tpu.memory_space<vmem>>, vector<4x8x1xf32>
      %cst_40 = arith.constant dense<0xFF800000> : vector<4x8xf32>
      %65 = vector.multi_reduction <maximumf>, %63, %cst_40 [2] : vector<4x8x8xf32> to vector<4x8xf32>
      %66 = vector.shape_cast %65 : vector<4x8xf32> to vector<4x8x1xf32>
      %67 = arith.maximumf %64, %66 : vector<4x8x1xf32>
      %68 = arith.subf %64, %67 : vector<4x8x1xf32>
      %69 = math.exp %68 : vector<4x8x1xf32>
      %70 = vector.broadcast %67 : vector<4x8x1xf32> to vector<4x8x8xf32>
      %71 = arith.subf %63, %70 : vector<4x8x8xf32>
      %72 = math.exp %71 : vector<4x8x8xf32>
      %c0_41 = arith.constant 0 : index
      %c0_42 = arith.constant 0 : index
      %c0_43 = arith.constant 0 : index
      %73 = vector.load %arg11[%c0_41, %c0_42, %c0_43] : memref<4x8x1xf32, #tpu.memory_space<vmem>>, vector<4x8x1xf32>
      %74 = arith.mulf %69, %73 : vector<4x8x1xf32>
      %cst_44 = arith.constant dense<0.000000e+00> : vector<4x8xf32>
      %75 = vector.multi_reduction <add>, %72, %cst_44 [2] : vector<4x8x8xf32> to vector<4x8xf32>
      %76 = vector.shape_cast %75 : vector<4x8xf32> to vector<4x8x1xf32>
      %77 = arith.addf %74, %76 : vector<4x8x1xf32>
      %c0_45 = arith.constant 0 : index
      %c0_46 = arith.constant 0 : index
      %c0_47 = arith.constant 0 : index
      %78 = vector.load %arg11[%c0_45, %c0_46, %c0_47] : memref<4x8x1xf32, #tpu.memory_space<vmem>>, vector<4x8x1xf32>
      tpu.vector_store %arg11[%c0_45, %c0_46, %c0_47], %77 {strides = array<i32>} : memref<4x8x1xf32, #tpu.memory_space<vmem>>, vector<4x8x1xf32>,
      %79 = arith.truncf %72 : vector<4x8x8xf32> to vector<4x8x8xbf16>
      %c0_48 = arith.constant 0 : index
      %c0_49 = arith.constant 0 : index
      %c0_50 = arith.constant 0 : index
      %80 = vector.load %arg9[%c0_48, %c0_49, %c0_50] : memref<4x8x32xbf16, #tpu.memory_space<vmem>>, vector<4x8x32xbf16>
      %cst_51 = arith.constant dense<0.000000e+00> : vector<4x8x32xf32>
      %81 = tpu.matmul %79, %80, %cst_51 {dimension_numbers = #tpu.dot_dimension_numbers<[2], [1], [1], [2], [0, 0, 0, 1, 1, 2], [0], [0]>} : vector<4x8x8xbf16>, vector<4x8x32xbf16>, vector<4x8x32xf32> -> vector<4x8x32xf32>
      %c0_52 = arith.constant 0 : index
      %c0_53 = arith.constant 0 : index
      %c0_54 = arith.constant 0 : index
      %82 = vector.load %arg12[%c0_52, %c0_53, %c0_54] : memref<4x8x32xf32, #tpu.memory_space<vmem>>, vector<4x8x32xf32>
      %83 = vector.broadcast %69 : vector<4x8x1xf32> to vector<4x8x32xf32>
      %84 = arith.mulf %83, %82 : vector<4x8x32xf32>
      %85 = arith.addf %84, %81 : vector<4x8x32xf32>
      %c0_55 = arith.constant 0 : index
      %c0_56 = arith.constant 0 : index
      %c0_57 = arith.constant 0 : index
      %86 = vector.load %arg12[%c0_55, %c0_56, %c0_57] : memref<4x8x32xf32, #tpu.memory_space<vmem>>, vector<4x8x32xf32>
      tpu.vector_store %arg12[%c0_55, %c0_56, %c0_57], %85 {strides = array<i32>} : memref<4x8x32xf32, #tpu.memory_space<vmem>>, vector<4x8x32xf32>,
      %c0_58 = arith.constant 0 : index
      %c0_59 = arith.constant 0 : index
      %c0_60 = arith.constant 0 : index
      %87 = vector.load %arg10[%c0_58, %c0_59, %c0_60] : memref<4x8x1xf32, #tpu.memory_space<vmem>>, vector<4x8x1xf32>
      tpu.vector_store %arg10[%c0_58, %c0_59, %c0_60], %67 {strides = array<i32>} : memref<4x8x1xf32, #tpu.memory_space<vmem>>, vector<4x8x1xf32>,
    } else {
    }
    %c0_i32_2 = arith.constant 0 : i32
    %6 = arith.cmpi eq, %arg2, %c0_i32_2 : i32
    %7 = arith.extui %6 : i1 to i32
    %c0_i32_3 = arith.constant 0 : i32
    %8 = arith.cmpi ne, %7, %c0_i32_3 : i32
    scf.if %8 {
      %c0 = arith.constant 0 : index
      %c0_4 = arith.constant 0 : index
      %c0_5 = arith.constant 0 : index
      %9 = vector.load %arg12[%c0, %c0_4, %c0_5] : memref<4x8x32xf32, #tpu.memory_space<vmem>>, vector<4x8x32xf32>
      %c0_6 = arith.constant 0 : index
      %c0_7 = arith.constant 0 : index
      %c0_8 = arith.constant 0 : index
      %10 = vector.load %arg11[%c0_6, %c0_7, %c0_8] : memref<4x8x1xf32, #tpu.memory_space<vmem>>, vector<4x8x1xf32>
      %11 = tpu.reciprocal %10 {approx = true} : vector<4x8x1xf32> -> vector<4x8x1xf32>
      %12 = vector.broadcast %11 : vector<4x8x1xf32> to vector<4x8x32xf32>
      %13 = arith.mulf %9, %12 : vector<4x8x32xf32>
      %14 = vector.extract_strided_slice %13 {offsets = [0, 0, 0], sizes = [1, 8, 32], strides = [1, 1, 1]} : vector<4x8x32xf32> to vector<1x8x32xf32>
      %15 = vector.shape_cast %14 : vector<1x8x32xf32> to vector<8x32xf32>
      %c0_9 = arith.constant 0 : index
      %c0_10 = arith.constant 0 : index
      %c0_11 = arith.constant 0 : index
      %16 = vector.load %arg6[%c0_9, %c0_10, %c0_11] : memref<1x8x128xf32, #tpu.memory_space<vmem>>, vector<1x8x32xf32>
      %17 = vector.shape_cast %16 : vector<1x8x32xf32> to vector<8x32xf32>
      %18 = vector.shape_cast %15 : vector<8x32xf32> to vector<1x8x32xf32>
      tpu.vector_store %arg6[%c0_9, %c0_10, %c0_11], %18 {strides = array<i32>} : memref<1x8x128xf32, #tpu.memory_space<vmem>>, vector<1x8x32xf32>,
      %19 = vector.extract_strided_slice %13 {offsets = [1, 0, 0], sizes = [1, 8, 32], strides = [1, 1, 1]} : vector<4x8x32xf32> to vector<1x8x32xf32>
      %20 = vector.shape_cast %19 : vector<1x8x32xf32> to vector<8x32xf32>
      %c0_12 = arith.constant 0 : index
      %c0_13 = arith.constant 0 : index
      %c32 = arith.constant 32 : index
      %21 = vector.load %arg6[%c0_12, %c0_13, %c32] : memref<1x8x128xf32, #tpu.memory_space<vmem>>, vector<1x8x32xf32>
      %22 = vector.shape_cast %21 : vector<1x8x32xf32> to vector<8x32xf32>
      %23 = vector.shape_cast %20 : vector<8x32xf32> to vector<1x8x32xf32>
      tpu.vector_store %arg6[%c0_12, %c0_13, %c32], %23 {strides = array<i32>} : memref<1x8x128xf32, #tpu.memory_space<vmem>>, vector<1x8x32xf32>,
      %24 = vector.extract_strided_slice %13 {offsets = [2, 0, 0], sizes = [1, 8, 32], strides = [1, 1, 1]} : vector<4x8x32xf32> to vector<1x8x32xf32>
      %25 = vector.shape_cast %24 : vector<1x8x32xf32> to vector<8x32xf32>
      %c0_14 = arith.constant 0 : index
      %c0_15 = arith.constant 0 : index
      %c64 = arith.constant 64 : index
      %26 = vector.load %arg6[%c0_14, %c0_15, %c64] : memref<1x8x128xf32, #tpu.memory_space<vmem>>, vector<1x8x32xf32>
      %27 = vector.shape_cast %26 : vector<1x8x32xf32> to vector<8x32xf32>
      %28 = vector.shape_cast %25 : vector<8x32xf32> to vector<1x8x32xf32>
      tpu.vector_store %arg6[%c0_14, %c0_15, %c64], %28 {strides = array<i32>} : memref<1x8x128xf32, #tpu.memory_space<vmem>>, vector<1x8x32xf32>,
      %29 = vector.extract_strided_slice %13 {offsets = [3, 0, 0], sizes = [1, 8, 32], strides = [1, 1, 1]} : vector<4x8x32xf32> to vector<1x8x32xf32>
      %30 = vector.shape_cast %29 : vector<1x8x32xf32> to vector<8x32xf32>
      %c0_16 = arith.constant 0 : index
      %c0_17 = arith.constant 0 : index
      %c96 = arith.constant 96 : index
      %31 = vector.load %arg6[%c0_16, %c0_17, %c96] : memref<1x8x128xf32, #tpu.memory_space<vmem>>, vector<1x8x32xf32>
      %32 = vector.shape_cast %31 : vector<1x8x32xf32> to vector<8x32xf32>
      %33 = vector.shape_cast %30 : vector<8x32xf32> to vector<1x8x32xf32>
      tpu.vector_store %arg6[%c0_16, %c0_17, %c96], %33 {strides = array<i32>} : memref<1x8x128xf32, #tpu.memory_space<vmem>>, vector<1x8x32xf32>,
    } else {
    }
    return
  }
  func.func @transform_0(%arg0: i32, %arg1: i32, %arg2: i32) -> (i32, i32, i32) {
    %c0_i32 = arith.constant 0 : i32
    %c0_i32_0 = arith.constant 0 : i32
    return %arg0, %arg1, %c0_i32 : i32, i32, i32
  }
  func.func @transform_1(%arg0: i32, %arg1: i32, %arg2: i32) -> (i32, i32, i32) {
    %c0_i32 = arith.constant 0 : i32
    %c0_i32_0 = arith.constant 0 : i32
    return %arg0, %arg2, %c0_i32 : i32, i32, i32
  }
  func.func @transform_2(%arg0: i32, %arg1: i32, %arg2: i32) -> (i32, i32) {
    %c0_i32 = arith.constant 0 : i32
    %c0_i32_0 = arith.constant 0 : i32
    %c0_i32_1 = arith.constant 0 : i32
    return %c0_i32, %c0_i32_0 : i32, i32
  }
  func.func @transform_3(%arg0: i32, %arg1: i32, %arg2: i32) -> (i32, i32, i32) {
    %c0_i32 = arith.constant 0 : i32
    %c0_i32_0 = arith.constant 0 : i32
    return %arg0, %arg1, %c0_i32 : i32, i32, i32
  }
}

module attributes {stable_mosaic.version = 11 : i64} {
  func.func @_flash_mha_kernel(%arg0: i32, %arg1: i32, %arg2: i32, %arg3: memref<1x8x32xf32, #tpu.memory_space<vmem>>, %arg4: memref<1x8x32xf32, #tpu.memory_space<vmem>>, %arg5: memref<32x384xbf16, #tpu.memory_space<vmem>>, %arg6: memref<1x8x128xf32, #tpu.memory_space<vmem>>, %arg7: memref<4x8x32xbf16, #tpu.memory_space<vmem>>, %arg8: memref<4x8x32xbf16, #tpu.memory_space<vmem>>, %arg9: memref<4x8x32xbf16, #tpu.memory_space<vmem>>, %arg10: memref<4x8x1xf32, #tpu.memory_space<vmem>>, %arg11: memref<4x8x1xf32, #tpu.memory_space<vmem>>, %arg12: memref<4x8x32xf32, #tpu.memory_space<vmem>>) attributes {dimension_semantics = [#tpu.dimension_semantics<parallel>, #tpu.dimension_semantics<parallel>, #tpu.dimension_semantics<arbitrary>], iteration_bounds = array<i64: 2, 1, 1>, scalar_prefetch = 0 : i64, scratch_operands = 6 : i64, tpu.core_type = #tpu.core_type<tc>, window_params = [{transform_indices = @transform_0, window_bounds = array<i64: 1, 8, 32>}, {transform_indices = @transform_1, window_bounds = array<i64: 1, 8, 32>}, {pipeline_mode = #tpu.pipeline_mode<synchronous>, transform_indices = @transform_2, window_bounds = array<i64: 32, 384>}, {transform_indices = @transform_3, window_bounds = array<i64: 1, 8, 128>}]} {
    %c0_i32 = arith.constant 0 : i32
    %0 = arith.cmpi eq, %arg2, %c0_i32 : i32
    %1 = arith.extui %0 : i1 to i32
    %c0_i32_0 = arith.constant 0 : i32
    %2 = arith.cmpi ne, %1, %c0_i32_0 : i32
    scf.if %2 {
      %c0 = arith.constant 0 : index
      %c0_4 = arith.constant 0 : index
      %c0_5 = arith.constant 0 : index
      %9 = vector.load %arg3[%c0, %c0_4, %c0_5] : memref<1x8x32xf32, #tpu.memory_space<vmem>>, vector<1x8x32xf32>
      %10 = vector.shape_cast %9 : vector<1x8x32xf32> to vector<8x32xf32>
      %11 = arith.truncf %10 : vector<8x32xf32> to vector<8x32xbf16>
      %c0_6 = arith.constant 0 : index
      %c0_7 = arith.constant 0 : index
      %12 = vector.load %arg5[%c0_6, %c0_7] : memref<32x384xbf16, #tpu.memory_space<vmem>>, vector<32x128xbf16>
      %cst = arith.constant dense<0.000000e+00> : vector<8x128xf32>
      %13 = tpu.matmul %11, %12, %cst {dimension_numbers = #tpu.dot_dimension_numbers<[1], [0], [0], [1], [0, 0, 1, 1], [], []>} : vector<8x32xbf16>, vector<32x128xbf16>, vector<8x128xf32> -> vector<8x128xf32>
      %14 = arith.truncf %13 : vector<8x128xf32> to vector<8x128xbf16>
      %15 = vector.extract_strided_slice %14 {offsets = [0, 0], sizes = [8, 32], strides = [1, 1]} : vector<8x128xbf16> to vector<8x32xbf16>
      %c0_8 = arith.constant 0 : index
      %c0_9 = arith.constant 0 : index
      %c0_10 = arith.constant 0 : index
      %16 = vector.load %arg7[%c0_8, %c0_9, %c0_10] : memref<4x8x32xbf16, #tpu.memory_space<vmem>>, vector<1x8x32xbf16>
      %17 = vector.shape_cast %16 : vector<1x8x32xbf16> to vector<8x32xbf16>
      %18 = vector.shape_cast %15 : vector<8x32xbf16> to vector<1x8x32xbf16>
      tpu.vector_store %arg7[%c0_8, %c0_9, %c0_10], %18 {strides = array<i32>} : memref<4x8x32xbf16, #tpu.memory_space<vmem>>, vector<1x8x32xbf16>,
      %19 = vector.extract_strided_slice %14 {offsets = [0, 32], sizes = [8, 32], strides = [1, 1]} : vector<8x128xbf16> to vector<8x32xbf16>
      %c1 = arith.constant 1 : index
      %c0_11 = arith.constant 0 : index
      %c0_12 = arith.constant 0 : index
      %20 = vector.load %arg7[%c1, %c0_11, %c0_12] : memref<4x8x32xbf16, #tpu.memory_space<vmem>>, vector<1x8x32xbf16>
      %21 = vector.shape_cast %20 : vector<1x8x32xbf16> to vector<8x32xbf16>
      %22 = vector.shape_cast %19 : vector<8x32xbf16> to vector<1x8x32xbf16>
      tpu.vector_store %arg7[%c1, %c0_11, %c0_12], %22 {strides = array<i32>} : memref<4x8x32xbf16, #tpu.memory_space<vmem>>, vector<1x8x32xbf16>,
      %23 = vector.extract_strided_slice %14 {offsets = [0, 64], sizes = [8, 32], strides = [1, 1]} : vector<8x128xbf16> to vector<8x32xbf16>
      %c2 = arith.constant 2 : index
      %c0_13 = arith.constant 0 : index
      %c0_14 = arith.constant 0 : index
      %24 = vector.load %arg7[%c2, %c0_13, %c0_14] : memref<4x8x32xbf16, #tpu.memory_space<vmem>>, vector<1x8x32xbf16>
      %25 = vector.shape_cast %24 : vector<1x8x32xbf16> to vector<8x32xbf16>
      %26 = vector.shape_cast %23 : vector<8x32xbf16> to vector<1x8x32xbf16>
      tpu.vector_store %arg7[%c2, %c0_13, %c0_14], %26 {strides = array<i32>} : memref<4x8x32xbf16, #tpu.memory_space<vmem>>, vector<1x8x32xbf16>,
      %27 = vector.extract_strided_slice %14 {offsets = [0, 96], sizes = [8, 32], strides = [1, 1]} : vector<8x128xbf16> to vector<8x32xbf16>
      %c3 = arith.constant 3 : index
      %c0_15 = arith.constant 0 : index
      %c0_16 = arith.constant 0 : index
      %28 = vector.load %arg7[%c3, %c0_15, %c0_16] : memref<4x8x32xbf16, #tpu.memory_space<vmem>>, vector<1x8x32xbf16>
      %29 = vector.shape_cast %28 : vector<1x8x32xbf16> to vector<8x32xbf16>
      %30 = vector.shape_cast %27 : vector<8x32xbf16> to vector<1x8x32xbf16>
      tpu.vector_store %arg7[%c3, %c0_15, %c0_16], %30 {strides = array<i32>} : memref<4x8x32xbf16, #tpu.memory_space<vmem>>, vector<1x8x32xbf16>,
      %cst_17 = arith.constant -1.000000e+30 : f32
      %31 = vector.broadcast %cst_17 : f32 to vector<4x8x1xf32>
      %c0_18 = arith.constant 0 : index
      %c0_19 = arith.constant 0 : index
      %c0_20 = arith.constant 0 : index
      %32 = vector.load %arg10[%c0_18, %c0_19, %c0_20] : memref<4x8x1xf32, #tpu.memory_space<vmem>>, vector<4x8x1xf32>
      tpu.vector_store %arg10[%c0_18, %c0_19, %c0_20], %31 {strides = array<i32>} : memref<4x8x1xf32, #tpu.memory_space<vmem>>, vector<4x8x1xf32>,
      %cst_21 = arith.constant 0.000000e+00 : f32
      %33 = vector.broadcast %cst_21 : f32 to vector<4x8x1xf32>
      %c0_22 = arith.constant 0 : index
      %c0_23 = arith.constant 0 : index
      %c0_24 = arith.constant 0 : index
      %34 = vector.load %arg11[%c0_22, %c0_23, %c0_24] : memref<4x8x1xf32, #tpu.memory_space<vmem>>, vector<4x8x1xf32>
      tpu.vector_store %arg11[%c0_22, %c0_23, %c0_24], %33 {strides = array<i32>} : memref<4x8x1xf32, #tpu.memory_space<vmem>>, vector<4x8x1xf32>,
      %cst_25 = arith.constant 0.000000e+00 : f32
      %35 = vector.broadcast %cst_25 : f32 to vector<4x8x32xf32>
      %c0_26 = arith.constant 0 : index
      %c0_27 = arith.constant 0 : index
      %c0_28 = arith.constant 0 : index
      %36 = vector.load %arg12[%c0_26, %c0_27, %c0_28] : memref<4x8x32xf32, #tpu.memory_space<vmem>>, vector<4x8x32xf32>
      tpu.vector_store %arg12[%c0_26, %c0_27, %c0_28], %35 {strides = array<i32>} : memref<4x8x32xf32, #tpu.memory_space<vmem>>, vector<4x8x32xf32>,
    } else {
    }
    %3 = arith.cmpi sle, %arg2, %arg1 : i32
    %4 = arith.extui %3 : i1 to i32
    %c0_i32_1 = arith.constant 0 : i32
    %5 = arith.cmpi ne, %4, %c0_i32_1 : i32
    scf.if %5 {
      %c0 = arith.constant 0 : index
      %c0_4 = arith.constant 0 : index
      %c0_5 = arith.constant 0 : index
      %9 = vector.load %arg4[%c0, %c0_4, %c0_5] : memref<1x8x32xf32, #tpu.memory_space<vmem>>, vector<1x8x32xf32>
      %10 = vector.shape_cast %9 : vector<1x8x32xf32> to vector<8x32xf32>
      %11 = arith.truncf %10 : vector<8x32xf32> to vector<8x32xbf16>
      %c0_6 = arith.constant 0 : index
      %c128 = arith.constant 128 : index
      %12 = vector.load %arg5[%c0_6, %c128] : memref<32x384xbf16, #tpu.memory_space<vmem>>, vector<32x256xbf16>
      %cst = arith.constant dense<0.000000e+00> : vector<8x256xf32>
      %13 = tpu.matmul %11, %12, %cst {dimension_numbers = #tpu.dot_dimension_numbers<[1], [0], [0], [1], [0, 0, 1, 1], [], []>} : vector<8x32xbf16>, vector<32x256xbf16>, vector<8x256xf32> -> vector<8x256xf32>
      %14 = arith.truncf %13 : vector<8x256xf32> to vector<8x256xbf16>
      %15 = vector.extract_strided_slice %14 {offsets = [0, 0], sizes = [8, 32], strides = [1, 1]} : vector<8x256xbf16> to vector<8x32xbf16>
      %c0_7 = arith.constant 0 : index
      %c0_8 = arith.constant 0 : index
      %c0_9 = arith.constant 0 : index
      %16 = vector.load %arg8[%c0_7, %c0_8, %c0_9] : memref<4x8x32xbf16, #tpu.memory_space<vmem>>, vector<1x8x32xbf16>
      %17 = vector.shape_cast %16 : vector<1x8x32xbf16> to vector<8x32xbf16>
      %18 = vector.shape_cast %15 : vector<8x32xbf16> to vector<1x8x32xbf16>
      tpu.vector_store %arg8[%c0_7, %c0_8, %c0_9], %18 {strides = array<i32>} : memref<4x8x32xbf16, #tpu.memory_space<vmem>>, vector<1x8x32xbf16>,
      %19 = vector.extract_strided_slice %14 {offsets = [0, 128], sizes = [8, 32], strides = [1, 1]} : vector<8x256xbf16> to vector<8x32xbf16>
      %c0_10 = arith.constant 0 : index
      %c0_11 = arith.constant 0 : index
      %c0_12 = arith.constant 0 : index
      %20 = vector.load %arg9[%c0_10, %c0_11, %c0_12] : memref<4x8x32xbf16, #tpu.memory_space<vmem>>, vector<1x8x32xbf16>
      %21 = vector.shape_cast %20 : vector<1x8x32xbf16> to vector<8x32xbf16>
      %22 = vector.shape_cast %19 : vector<8x32xbf16> to vector<1x8x32xbf16>
      tpu.vector_store %arg9[%c0_10, %c0_11, %c0_12], %22 {strides = array<i32>} : memref<4x8x32xbf16, #tpu.memory_space<vmem>>, vector<1x8x32xbf16>,
      %23 = vector.extract_strided_slice %14 {offsets = [0, 32], sizes = [8, 32], strides = [1, 1]} : vector<8x256xbf16> to vector<8x32xbf16>
      %c1 = arith.constant 1 : index
      %c0_13 = arith.constant 0 : index
      %c0_14 = arith.constant 0 : index
      %24 = vector.load %arg8[%c1, %c0_13, %c0_14] : memref<4x8x32xbf16, #tpu.memory_space<vmem>>, vector<1x8x32xbf16>
      %25 = vector.shape_cast %24 : vector<1x8x32xbf16> to vector<8x32xbf16>
      %26 = vector.shape_cast %23 : vector<8x32xbf16> to vector<1x8x32xbf16>
      tpu.vector_store %arg8[%c1, %c0_13, %c0_14], %26 {strides = array<i32>} : memref<4x8x32xbf16, #tpu.memory_space<vmem>>, vector<1x8x32xbf16>,
      %27 = vector.extract_strided_slice %14 {offsets = [0, 160], sizes = [8, 32], strides = [1, 1]} : vector<8x256xbf16> to vector<8x32xbf16>
      %c1_15 = arith.constant 1 : index
      %c0_16 = arith.constant 0 : index
      %c0_17 = arith.constant 0 : index
      %28 = vector.load %arg9[%c1_15, %c0_16, %c0_17] : memref<4x8x32xbf16, #tpu.memory_space<vmem>>, vector<1x8x32xbf16>
      %29 = vector.shape_cast %28 : vector<1x8x32xbf16> to vector<8x32xbf16>
      %30 = vector.shape_cast %27 : vector<8x32xbf16> to vector<1x8x32xbf16>
      tpu.vector_store %arg9[%c1_15, %c0_16, %c0_17], %30 {strides = array<i32>} : memref<4x8x32xbf16, #tpu.memory_space<vmem>>, vector<1x8x32xbf16>,
      %31 = vector.extract_strided_slice %14 {offsets = [0, 64], sizes = [8, 32], strides = [1, 1]} : vector<8x256xbf16> to vector<8x32xbf16>
      %c2 = arith.constant 2 : index
      %c0_18 = arith.constant 0 : index
      %c0_19 = arith.constant 0 : index
      %32 = vector.load %arg8[%c2, %c0_18, %c0_19] : memref<4x8x32xbf16, #tpu.memory_space<vmem>>, vector<1x8x32xbf16>
      %33 = vector.shape_cast %32 : vector<1x8x32xbf16> to vector<8x32xbf16>
      %34 = vector.shape_cast %31 : vector<8x32xbf16> to vector<1x8x32xbf16>
      tpu.vector_store %arg8[%c2, %c0_18, %c0_19], %34 {strides = array<i32>} : memref<4x8x32xbf16, #tpu.memory_space<vmem>>, vector<1x8x32xbf16>,
      %35 = vector.extract_strided_slice %14 {offsets = [0, 192], sizes = [8, 32], strides = [1, 1]} : vector<8x256xbf16> to vector<8x32xbf16>
      %c2_20 = arith.constant 2 : index
      %c0_21 = arith.constant 0 : index
      %c0_22 = arith.constant 0 : index
      %36 = vector.load %arg9[%c2_20, %c0_21, %c0_22] : memref<4x8x32xbf16, #tpu.memory_space<vmem>>, vector<1x8x32xbf16>
      %37 = vector.shape_cast %36 : vector<1x8x32xbf16> to vector<8x32xbf16>
      %38 = vector.shape_cast %35 : vector<8x32xbf16> to vector<1x8x32xbf16>
      tpu.vector_store %arg9[%c2_20, %c0_21, %c0_22], %38 {strides = array<i32>} : memref<4x8x32xbf16, #tpu.memory_space<vmem>>, vector<1x8x32xbf16>,
      %39 = vector.extract_strided_slice %14 {offsets = [0, 96], sizes = [8, 32], strides = [1, 1]} : vector<8x256xbf16> to vector<8x32xbf16>
      %c3 = arith.constant 3 : index
      %c0_23 = arith.constant 0 : index
      %c0_24 = arith.constant 0 : index
      %40 = vector.load %arg8[%c3, %c0_23, %c0_24] : memref<4x8x32xbf16, #tpu.memory_space<vmem>>, vector<1x8x32xbf16>
      %41 = vector.shape_cast %40 : vector<1x8x32xbf16> to vector<8x32xbf16>
      %42 = vector.shape_cast %39 : vector<8x32xbf16> to vector<1x8x32xbf16>
      tpu.vector_store %arg8[%c3, %c0_23, %c0_24], %42 {strides = array<i32>} : memref<4x8x32xbf16, #tpu.memory_space<vmem>>, vector<1x8x32xbf16>,
      %43 = vector.extract_strided_slice %14 {offsets = [0, 224], sizes = [8, 32], strides = [1, 1]} : vector<8x256xbf16> to vector<8x32xbf16>
      %c3_25 = arith.constant 3 : index
      %c0_26 = arith.constant 0 : index
      %c0_27 = arith.constant 0 : index
      %44 = vector.load %arg9[%c3_25, %c0_26, %c0_27] : memref<4x8x32xbf16, #tpu.memory_space<vmem>>, vector<1x8x32xbf16>
      %45 = vector.shape_cast %44 : vector<1x8x32xbf16> to vector<8x32xbf16>
      %46 = vector.shape_cast %43 : vector<8x32xbf16> to vector<1x8x32xbf16>
      tpu.vector_store %arg9[%c3_25, %c0_26, %c0_27], %46 {strides = array<i32>} : memref<4x8x32xbf16, #tpu.memory_space<vmem>>, vector<1x8x32xbf16>,
      %c0_28 = arith.constant 0 : index
      %c0_29 = arith.constant 0 : index
      %c0_30 = arith.constant 0 : index
      %47 = vector.load %arg7[%c0_28, %c0_29, %c0_30] : memref<4x8x32xbf16, #tpu.memory_space<vmem>>, vector<4x8x32xbf16>
      %c0_31 = arith.constant 0 : index
      %c0_32 = arith.constant 0 : index
      %c0_33 = arith.constant 0 : index
      %48 = vector.load %arg8[%c0_31, %c0_32, %c0_33] : memref<4x8x32xbf16, #tpu.memory_space<vmem>>, vector<4x8x32xbf16>
      %cst_34 = arith.constant dense<0.000000e+00> : vector<4x8x8xf32>
      %49 = tpu.matmul %47, %48, %cst_34 {dimension_numbers = #tpu.dot_dimension_numbers<[2], [2], [1], [1], [0, 0, 0, 1, 1, 1], [0], [0]>} : vector<4x8x32xbf16>, vector<4x8x32xbf16>, vector<4x8x8xf32> -> vector<4x8x8xf32>
      %c8_i32 = arith.constant 8 : i32
      %50 = arith.muli %arg1, %c8_i32 : i32
      %51 = tpu.iota {dimensions = array<i32: 0>} : vector<8x8xi32>
      %52 = vector.broadcast %50 : i32 to vector<8x8xi32>
      %53 = arith.addi %52, %51 : vector<8x8xi32>
      %c8_i32_35 = arith.constant 8 : i32
      %54 = arith.muli %arg2, %c8_i32_35 : i32
      %55 = tpu.iota {dimensions = array<i32: 1>} : vector<8x8xi32>
      %56 = vector.broadcast %54 : i32 to vector<8x8xi32>
      %57 = arith.addi %56, %55 : vector<8x8xi32>
      %58 = arith.cmpi sgt, %57, %53 : vector<8x8xi32>
      %59 = vector.shape_cast %58 : vector<8x8xi1> to vector<1x8x8xi1>
      %cst_36 = arith.constant -1.000000e+30 : f32
      %60 = vector.shape_cast %59 : vector<1x8x8xi1> to vector<1x8x8xi1>
      %61 = vector.broadcast %60 : vector<1x8x8xi1> to vector<4x8x8xi1>
      %62 = vector.broadcast %cst_36 : f32 to vector<4x8x8xf32>
      %63 = arith.select %61, %62, %49 : vector<4x8x8xi1>, vector<4x8x8xf32>
      %c0_37 = arith.constant 0 : index
      %c0_38 = arith.constant 0 : index
      %c0_39 = arith.constant 0 : index
      %64 = vector.load %arg10[%c0_37, %c0_38, %c0_39] : memref<4x8x1xf32, #tpu.memory_space<vmem>>, vector<4x8x1xf32>
      %cst_40 = arith.constant dense<0xFF800000> : vector<4x8xf32>
      %65 = vector.multi_reduction <maximumf>, %63, %cst_40 [2] : vector<4x8x8xf32> to vector<4x8xf32>
      %66 = vector.shape_cast %65 : vector<4x8xf32> to vector<4x8x1xf32>
      %67 = arith.maximumf %64, %66 : vector<4x8x1xf32>
      %68 = arith.subf %64, %67 : vector<4x8x1xf32>
      %69 = math.exp %68 : vector<4x8x1xf32>
      %70 = vector.broadcast %67 : vector<4x8x1xf32> to vector<4x8x8xf32>
      %71 = arith.subf %63, %70 : vector<4x8x8xf32>
      %72 = math.exp %71 : vector<4x8x8xf32>
      %c0_41 = arith.constant 0 : index
      %c0_42 = arith.constant 0 : index
      %c0_43 = arith.constant 0 : index
      %73 = vector.load %arg11[%c0_41, %c0_42, %c0_43] : memref<4x8x1xf32, #tpu.memory_space<vmem>>, vector<4x8x1xf32>
      %74 = arith.mulf %69, %73 : vector<4x8x1xf32>
      %cst_44 = arith.constant dense<0.000000e+00> : vector<4x8xf32>
      %75 = vector.multi_reduction <add>, %72, %cst_44 [2] : vector<4x8x8xf32> to vector<4x8xf32>
      %76 = vector.shape_cast %75 : vector<4x8xf32> to vector<4x8x1xf32>
      %77 = arith.addf %74, %76 : vector<4x8x1xf32>
      %c0_45 = arith.constant 0 : index
      %c0_46 = arith.constant 0 : index
      %c0_47 = arith.constant 0 : index
      %78 = vector.load %arg11[%c0_45, %c0_46, %c0_47] : memref<4x8x1xf32, #tpu.memory_space<vmem>>, vector<4x8x1xf32>
      tpu.vector_store %arg11[%c0_45, %c0_46, %c0_47], %77 {strides = array<i32>} : memref<4x8x1xf32, #tpu.memory_space<vmem>>, vector<4x8x1xf32>,
      %79 = arith.truncf %72 : vector<4x8x8xf32> to vector<4x8x8xbf16>
      %c0_48 = arith.constant 0 : index
      %c0_49 = arith.constant 0 : index
      %c0_50 = arith.constant 0 : index
      %80 = vector.load %arg9[%c0_48, %c0_49, %c0_50] : memref<4x8x32xbf16, #tpu.memory_space<vmem>>, vector<4x8x32xbf16>
      %cst_51 = arith.constant dense<0.000000e+00> : vector<4x8x32xf32>
      %81 = tpu.matmul %79, %80, %cst_51 {dimension_numbers = #tpu.dot_dimension_numbers<[2], [1], [1], [2], [0, 0, 0, 1, 1, 2], [0], [0]>} : vector<4x8x8xbf16>, vector<4x8x32xbf16>, vector<4x8x32xf32> -> vector<4x8x32xf32>
      %c0_52 = arith.constant 0 : index
      %c0_53 = arith.constant 0 : index
      %c0_54 = arith.constant 0 : index
      %82 = vector.load %arg12[%c0_52, %c0_53, %c0_54] : memref<4x8x32xf32, #tpu.memory_space<vmem>>, vector<4x8x32xf32>
      %83 = vector.broadcast %69 : vector<4x8x1xf32> to vector<4x8x32xf32>
      %84 = arith.mulf %83, %82 : vector<4x8x32xf32>
      %85 = arith.addf %84, %81 : vector<4x8x32xf32>
      %c0_55 = arith.constant 0 : index
      %c0_56 = arith.constant 0 : index
      %c0_57 = arith.constant 0 : index
      %86 = vector.load %arg12[%c0_55, %c0_56, %c0_57] : memref<4x8x32xf32, #tpu.memory_space<vmem>>, vector<4x8x32xf32>
      tpu.vector_store %arg12[%c0_55, %c0_56, %c0_57], %85 {strides = array<i32>} : memref<4x8x32xf32, #tpu.memory_space<vmem>>, vector<4x8x32xf32>,
      %c0_58 = arith.constant 0 : index
      %c0_59 = arith.constant 0 : index
      %c0_60 = arith.constant 0 : index
      %87 = vector.load %arg10[%c0_58, %c0_59, %c0_60] : memref<4x8x1xf32, #tpu.memory_space<vmem>>, vector<4x8x1xf32>
      tpu.vector_store %arg10[%c0_58, %c0_59, %c0_60], %67 {strides = array<i32>} : memref<4x8x1xf32, #tpu.memory_space<vmem>>, vector<4x8x1xf32>,
    } else {
    }
    %c0_i32_2 = arith.constant 0 : i32
    %6 = arith.cmpi eq, %arg2, %c0_i32_2 : i32
    %7 = arith.extui %6 : i1 to i32
    %c0_i32_3 = arith.constant 0 : i32
    %8 = arith.cmpi ne, %7, %c0_i32_3 : i32
    scf.if %8 {
      %c0 = arith.constant 0 : index
      %c0_4 = arith.constant 0 : index
      %c0_5 = arith.constant 0 : index
      %9 = vector.load %arg12[%c0, %c0_4, %c0_5] : memref<4x8x32xf32, #tpu.memory_space<vmem>>, vector<4x8x32xf32>
      %c0_6 = arith.constant 0 : index
      %c0_7 = arith.constant 0 : index
      %c0_8 = arith.constant 0 : index
      %10 = vector.load %arg11[%c0_6, %c0_7, %c0_8] : memref<4x8x1xf32, #tpu.memory_space<vmem>>, vector<4x8x1xf32>
      %11 = tpu.reciprocal %10 {approx = true} : vector<4x8x1xf32> -> vector<4x8x1xf32>
      %12 = vector.broadcast %11 : vector<4x8x1xf32> to vector<4x8x32xf32>
      %13 = arith.mulf %9, %12 : vector<4x8x32xf32>
      %14 = vector.extract_strided_slice %13 {offsets = [0, 0, 0], sizes = [1, 8, 32], strides = [1, 1, 1]} : vector<4x8x32xf32> to vector<1x8x32xf32>
      %15 = vector.shape_cast %14 : vector<1x8x32xf32> to vector<8x32xf32>
      %c0_9 = arith.constant 0 : index
      %c0_10 = arith.constant 0 : index
      %c0_11 = arith.constant 0 : index
      %16 = vector.load %arg6[%c0_9, %c0_10, %c0_11] : memref<1x8x128xf32, #tpu.memory_space<vmem>>, vector<1x8x32xf32>
      %17 = vector.shape_cast %16 : vector<1x8x32xf32> to vector<8x32xf32>
      %18 = vector.shape_cast %15 : vector<8x32xf32> to vector<1x8x32xf32>
      tpu.vector_store %arg6[%c0_9, %c0_10, %c0_11], %18 {strides = array<i32>} : memref<1x8x128xf32, #tpu.memory_space<vmem>>, vector<1x8x32xf32>,
      %19 = vector.extract_strided_slice %13 {offsets = [1, 0, 0], sizes = [1, 8, 32], strides = [1, 1, 1]} : vector<4x8x32xf32> to vector<1x8x32xf32>
      %20 = vector.shape_cast %19 : vector<1x8x32xf32> to vector<8x32xf32>
      %c0_12 = arith.constant 0 : index
      %c0_13 = arith.constant 0 : index
      %c32 = arith.constant 32 : index
      %21 = vector.load %arg6[%c0_12, %c0_13, %c32] : memref<1x8x128xf32, #tpu.memory_space<vmem>>, vector<1x8x32xf32>
      %22 = vector.shape_cast %21 : vector<1x8x32xf32> to vector<8x32xf32>
      %23 = vector.shape_cast %20 : vector<8x32xf32> to vector<1x8x32xf32>
      tpu.vector_store %arg6[%c0_12, %c0_13, %c32], %23 {strides = array<i32>} : memref<1x8x128xf32, #tpu.memory_space<vmem>>, vector<1x8x32xf32>,
      %24 = vector.extract_strided_slice %13 {offsets = [2, 0, 0], sizes = [1, 8, 32], strides = [1, 1, 1]} : vector<4x8x32xf32> to vector<1x8x32xf32>
      %25 = vector.shape_cast %24 : vector<1x8x32xf32> to vector<8x32xf32>
      %c0_14 = arith.constant 0 : index
      %c0_15 = arith.constant 0 : index
      %c64 = arith.constant 64 : index
      %26 = vector.load %arg6[%c0_14, %c0_15, %c64] : memref<1x8x128xf32, #tpu.memory_space<vmem>>, vector<1x8x32xf32>
      %27 = vector.shape_cast %26 : vector<1x8x32xf32> to vector<8x32xf32>
      %28 = vector.shape_cast %25 : vector<8x32xf32> to vector<1x8x32xf32>
      tpu.vector_store %arg6[%c0_14, %c0_15, %c64], %28 {strides = array<i32>} : memref<1x8x128xf32, #tpu.memory_space<vmem>>, vector<1x8x32xf32>,
      %29 = vector.extract_strided_slice %13 {offsets = [3, 0, 0], sizes = [1, 8, 32], strides = [1, 1, 1]} : vector<4x8x32xf32> to vector<1x8x32xf32>
      %30 = vector.shape_cast %29 : vector<1x8x32xf32> to vector<8x32xf32>
      %c0_16 = arith.constant 0 : index
      %c0_17 = arith.constant 0 : index
      %c96 = arith.constant 96 : index
      %31 = vector.load %arg6[%c0_16, %c0_17, %c96] : memref<1x8x128xf32, #tpu.memory_space<vmem>>, vector<1x8x32xf32>
      %32 = vector.shape_cast %31 : vector<1x8x32xf32> to vector<8x32xf32>
      %33 = vector.shape_cast %30 : vector<8x32xf32> to vector<1x8x32xf32>
      tpu.vector_store %arg6[%c0_16, %c0_17, %c96], %33 {strides = array<i32>} : memref<1x8x128xf32, #tpu.memory_space<vmem>>, vector<1x8x32xf32>,
    } else {
    }
    return
  }
  func.func @transform_0(%arg0: i32, %arg1: i32, %arg2: i32) -> (i32, i32, i32) {
    %c0_i32 = arith.constant 0 : i32
    %c0_i32_0 = arith.constant 0 : i32
    return %arg0, %arg1, %c0_i32 : i32, i32, i32
  }
  func.func @transform_1(%arg0: i32, %arg1: i32, %arg2: i32) -> (i32, i32, i32) {
    %c0_i32 = arith.constant 0 : i32
    %c0_i32_0 = arith.constant 0 : i32
    return %arg0, %arg2, %c0_i32 : i32, i32, i32
  }
  func.func @transform_2(%arg0: i32, %arg1: i32, %arg2: i32) -> (i32, i32) {
    %c0_i32 = arith.constant 0 : i32
    %c0_i32_0 = arith.constant 0 : i32
    %c0_i32_1 = arith.constant 0 : i32
    return %c0_i32, %c0_i32_0 : i32, i32
  }
  func.func @transform_3(%arg0: i32, %arg1: i32, %arg2: i32) -> (i32, i32, i32) {
    %c0_i32 = arith.constant 0 : i32
    %c0_i32_0 = arith.constant 0 : i32
    return %arg0, %arg1, %c0_i32 : i32, i32, i32
  }
}

</mosaic_0001>

<bundles_post_ra>
// kernel: tpu_custom_call.1
= control target key start
LH: loop header
LB: loop body
LE: loop exit
PB: predicated region body
PF: predicated region fallthrough
CT: control target
= control target key end

     0   :  { %s2081_s0 = inlined_call_operand.hbm [shape: f32[2,8,32], index: 0, kind: input, shape index: {}]   ;;  %s2082_s1 = inlined_call_operand.hbm [shape: f32[2,8,32], index: 1, kind: input, shape index: {}]   ;;  %s2083_s2 = inlined_call_operand.hbm [shape: bf16[32,384], index: 2, kind: input, shape index: {}]   ;;  %s2084_s3 = inlined_call_operand.hbm [shape: f32[2,8,128], index: 3, kind: output, shape index: {}]  }
   0x1   :  { %2090 = sst [smem:[#allocation20_spill]] %s2083_s2 }
   0x2   :  { %8 = vsyncpa [#allocation9], 0 }
   0x3   :  { %10 = vsyncpa [#allocation9 + $0x1], 0 }
   0x4   :  { %11 = vsyncpa [#allocation12], 0 }
   0x5   :  { %13 = vsyncpa [#allocation12 + $0x1], 0 }
   0x6   :  { %14 = vsyncpa [#allocation10], 0 }
   0x7   :  { %16 = vsyncpa [#allocation10 + $0x1], 0  ;;  %s1656_s12 = smov 0   ;;  %s1658_s13 = smov 0  }
   0x8   :  { %s1660_s14 = smov 0   ;;  %s1662_s15 = smov 0  }
   0x9   :  { %s1664_s16 = smov 0   ;;  %s1666_s17 = smov 0  }
   0xa LB: > { %s1687_s18 = sadd.s32 4294967295, %s1621_s17   ;;  %s1208_s19 = sadd.s32 4294967294, %s1621_s17   ;;  %s1621_s17 = sphi %s1666_s17, %s22_s17   ;;  %s1617_s16 = sphi %s1664_s16, %s2113_s16   ;;  %s1613_s15 = sphi %s1662_s15, %s2112_s15   ;;  %s1609_s14 = sphi %s1660_s14, %s2111_s14   ;;  %s1605_s13 = sphi %s1658_s13, %s2110_s13   ;;  %s1601_s12 = sphi %s1656_s12, %s2109_s12  }
   0xb   : > { %p63_p0 = scmp.ne.s32.totalorder %s1605_s13, %s1601_s12  ;;  %p2085_p1 = scmp.eq.s32.totalorder %s1687_s18, 0 }
   0xc   : > { %p144_p3 = scmp.eq.s32.totalorder %s1208_s19, 1  ;;  %p1209_p5 = scmp.ge.s32.totalorder %s1621_s17, 1 }
   0xd   : > { %p1696_p4 = por %p2085_p1, %p63_p0  ;;  %p151_p7 = scmp.lt.s32.totalorder %s1621_s17, 3 }
   0xe   : > { %p1701_p6 = por %p144_p3, %p63_p0  ;;  %s1623_s23 = smov [#allocation13]  }
   0xf   : > { %s2091_s20 = scalar_select %p1696_p4, 1, 0 }
  0x10   : > { %s2092_s21 = scalar_select %p1701_p6, 1, 0 }
  0x11   : > { %p1706_p8 = pnand %p1209_p5, %p151_p7  ;;  %s163_s24 = sshll.u32 %s1623_s23, 4  ;;  %s164_s24 = int_to_ptr.vmem [resolvable:$true] %s163_s24 }
  0x12   : > { %s41_s26 = sadd.s32 1, %s1617_s16  ;;  %s2095_s2 = sld [smem:[#allocation20_spill]] }
  0x13   : > { %s2093_s22 = scalar_select %p1706_p8, 1, 0 }
  0x14   : > { %p1332_p9 = pneg %p1706_p8 }
  0x16   : > { %p1715_p11 = pnand %p1332_p9, %p2085_p1 }
  0x18   : > { %s1443_s29 = scalar_lea.hbm %s2095_s2, 768  ;;  %p1445_p13 = pneg %p1715_p11 }
  0x19   : > { %p1444_p12 = scmp.ne.s32.totalorder %s2095_s2, %s1443_s29  ;;  %p1450_p5 = scmp.lt.u32.totalorder %s1443_s29, %s2095_s2 }
  0x1b   : > { %p1446_p0 = pnand %p1445_p13, %p1444_p12 }
  0x1d   : > { %p1447_p3 = pneg %p1446_p0 }
  0x1f   : > { %p1452_p7 = pnand %p1450_p5, %p1447_p3 }
  0x21   : > { %1455 = shalt.err (!%p1452_p7)
}
  0x22   : > { %s1456_s7 = scalar_lea.vmem %s164_s24, 768  ;;  %p1464_p2 = scmp.lt.s32.totalorder %s164_s24, %s164_s24 }
  0x23   : > { %p1457_p9 = scmp.ne.s32.totalorder %s164_s24, %s1456_s7  ;;  %p1465_p6 = scmp.lt.s32.totalorder %s1456_s7, %s1456_s7 }
  0x25   : > { %p1459_p10 = pnand %p1457_p9, %p1445_p13  ;;  %p1466_p4 = por %p1465_p6, %p1464_p2 }
  0x27   : > { %p1460_p1 = pneg %p1459_p10 }
  0x29   : > { %p1467_p8 = pnand %p1466_p4, %p1460_p1 }
  0x2b   : > { %1470 = shalt.err (!%p1467_p8)
}
  0x2c   : > { %s1624_s8 = smov 192   ;;  %s1625_s9 = smov 12  }
  0x2d   : > { %1335 = dma.hbm_to_vmem [thread:$0]  (!%p1715_p11), %s2095_s2, 768, %s164_s24, [#allocation12], %s1624_s8, %s1624_s8, %s1625_s9  }
  0x2e   : > { %p43_p1 = scmp.ge.s32.totalorder %s41_s26, 2  ;;  %s50_s19 = sadd.s32 1, %s1609_s14 }
  0x2f   : > { %p57_p2 = scmp.ne.s32.totalorder %s1609_s14, %s1605_s13  ;;  %p58_p4 = scmp.eq.s32.totalorder %s1621_s17, 0 }
  0x30   : > { %s2115_s26 = smov (%p43_p1, %s41_s26), 0  ;;  %p2098_p8 = scmp.eq.s32.totalorder %s1687_s18, 1 }
  0x31   : > { %2096 = sst [smem:[#allocation19_spill]] %s2115_s26  ;;  %p1742_p6 = por %p58_p4, %p57_p2 }
  0x32   : > { %p1748_p10 = por %p2098_p8, %p57_p2  ;;  %s45_s27 = ssub.s32 %s1617_s16, %s2115_s26 }
  0x33   : > { %p1348_p11 = scmp.lt.s32.totalorder %s1621_s17, 2  ;;  %p48_p12 = scmp.eq.s32.totalorder %s45_s27, 0 }
  0x34   : > { %s2099_s25 = scalar_select %p1748_p10, 1, 0 }
  0x35   : > { %s177_s24 = sand.u32 1, %s1609_s14   ;;  %s1213_s30 = sshll.u32 %s1617_s16, 7 }
  0x36   : > { %s1756_s28 = sshll.u32 %s177_s24, 3  ;;  %s1765_s6 = scalar_lea.hbm %s2081_s0, %s1213_s30 }
  0x37   : > { %s1759_s29 = scalar_select %p48_p12, %s1609_s14, %s50_s19  }
  0x38   : > { %s181_s7 = scalar_lea.vmem [#allocation8], %s1756_s28  ;;  %p1772_p13 = pnand %p1348_p11, %p1742_p6 }
  0x39   : > { %s189_s8 = sshll.u32 %s181_s7, 4  ;;  %s1779_s19 = scalar_lea.hbm %s2082_s1, %s1213_s30  ;;  %s1768_s8 = int_to_ptr.vmem [resolvable:$true] %s189_s8 }
  0x3a   : > { %s196_s27 = sand.u32 1, %s1621_s17   ;;  %s178_s4 = scalar_lea.sflag [#allocation9], %s177_s24 }
  0x3b   : > { %s1471_s5 = scalar_lea.hbm %s1765_s6, 128  ;;  %p1473_p3 = pneg %p1772_p13 }
  0x3c   : > { %p1472_p0 = scmp.ne.s32.totalorder %s1765_s6, %s1471_s5  ;;  %s1476_s2 = scalar_lea.hbm %s2081_s0, 256 }
  0x3d   : > { %p1477_p9 = scmp.lt.u32.totalorder %s1765_s6, %s2081_s0  ;;  %p1478_p1 = scmp.lt.u32.totalorder %s1476_s2, %s1471_s5 }
  0x3e   : > { %p1474_p5 = pnand %p1473_p3, %p1472_p0  ;;  %p1480_p4 = scmp.lt.u32.totalorder %s1471_s5, %s1765_s6 }
  0x3f   : > { %p1479_p2 = por %p1478_p1, %p1477_p9 }
  0x40   : > { %p1475_p7 = pneg %p1474_p5 }
  0x41   : > { %p1481_p6 = por %p1480_p4, %p1479_p2 }
  0x43   : > { %p1482_p8 = pnand %p1481_p6, %p1475_p7 }
  0x45   : > { %1485 = shalt.err (!%p1482_p8)
}
  0x46   : > { %s1486_s24 = scalar_lea.vmem %s1768_s8, 128  ;;  %s1626_s30 = smov [#allocation8]  }
  0x47   : > { %p1487_p11 = scmp.ne.s32.totalorder %s1768_s8, %s1486_s24  ;;  %s1491_s11 = sshll.u32 %s1626_s30, 4  ;;  %s1492_s11 = int_to_ptr.vmem [resolvable:$false] %s1491_s11 }
  0x48   : > { %s1493_s26 = scalar_lea.vmem %s1492_s11, 256  ;;  %p1494_p5 = scmp.lt.s32.totalorder %s1768_s8, %s1492_s11 }
  0x49   : > { %p1489_p12 = pnand %p1487_p11, %p1473_p3  ;;  %p1495_p9 = scmp.lt.s32.totalorder %s1493_s26, %s1486_s24 }
  0x4b   : > { %p1490_p0 = pneg %p1489_p12  ;;  %p1496_p1 = por %p1495_p9, %p1494_p5 }
  0x4d   : > { %p1497_p2 = pnand %p1496_p1, %p1490_p0 }
  0x4f   : > { %1500 = shalt.err (!%p1497_p2)
}
  0x50   : > { %1339 = dma.hbm_to_vmem [thread:$0]  (!%p1772_p13), %s1765_s6, 128, %s1768_s8, %s178_s4  }
  0x51   : > { %s200_s2 = scalar_lea.vmem [#allocation11], %s1756_s28  ;;  %s197_s23 = scalar_lea.sflag [#allocation12], %s196_s27 }
  0x52   : > { %s208_s5 = sshll.u32 %s200_s2, 4  ;;  %s1501_s7 = scalar_lea.hbm %s1779_s19, 128  ;;  %s209_s5 = int_to_ptr.vmem [resolvable:$true] %s208_s5 }
  0x53   : > { %p1502_p7 = scmp.ne.s32.totalorder %s1779_s19, %s1501_s7  ;;  %s1506_s30 = scalar_lea.hbm %s2082_s1, 256 }
  0x54   : > { %p1507_p8 = scmp.lt.u32.totalorder %s1779_s19, %s2082_s1  ;;  %p1508_p11 = scmp.lt.u32.totalorder %s1506_s30, %s1501_s7 }
  0x55   : > { %p1504_p4 = pnand %p1502_p7, %p1473_p3  ;;  %p1510_p0 = scmp.lt.u32.totalorder %s1501_s7, %s1779_s19 }
  0x56   : > { %p1509_p12 = por %p1508_p11, %p1507_p8 }
  0x57   : > { %p1505_p6 = pneg %p1504_p4 }
  0x58   : > { %p1511_p5 = por %p1510_p0, %p1509_p12 }
  0x5a   : > { %p1512_p9 = pnand %p1511_p5, %p1505_p6 }
  0x5c   : > { %1515 = shalt.err (!%p1512_p9)
}
  0x5d   : > { %s1516_s28 = scalar_lea.vmem %s209_s5, 128  ;;  %s1627_s6 = smov [#allocation11]  }
  0x5e   : > { %p1517_p1 = scmp.ne.s32.totalorder %s209_s5, %s1516_s28  ;;  %s1521_s8 = sshll.u32 %s1627_s6, 4  ;;  %s1522_s8 = int_to_ptr.vmem [resolvable:$false] %s1521_s8 }
  0x5f   : > { %s1523_s27 = scalar_lea.vmem %s1522_s8, 256  ;;  %p1524_p4 = scmp.lt.s32.totalorder %s209_s5, %s1522_s8 }
  0x60   : > { %p1519_p2 = pnand %p1517_p1, %p1473_p3  ;;  %p1525_p10 = scmp.lt.s32.totalorder %s1523_s27, %s1516_s28 }
  0x62   : > { %p1520_p7 = pneg %p1519_p2  ;;  %p1526_p8 = por %p1525_p10, %p1524_p4 }
  0x64   : > { %p1527_p11 = pnand %p1526_p8, %p1520_p7 }
  0x66   : > { %1530 = shalt.err (!%p1527_p11)
}
  0x67   : > { %1342 = dma.hbm_to_vmem [thread:$0]  (!%p1772_p13), %s1779_s19, 128, %s209_s5, %s197_s23  }
  0x68   : > { %p2101_p6 = scmp.ne.s32.totalorder %s2093_s22, 0 }
  0x69   : > { %s1832_s4 = sand.u32 (!%p2101_p6), 1, %s1605_s13   ;;  %p2102_p10 = scmp.ne.s32.totalorder (!%p2101_p6), %s2091_s20, 0 }
  0x6a   : > { %217 = sbr.rel (%p2101_p6) target bundleno = 1409 (0x581), region = 32  ;;  %s1835_s2 = sshll.u32 (!%p2101_p6), %s1832_s4, 3 }
  0x6b   : > { %s220_s7 = scalar_lea.sflag (!%p2101_p6), [#allocation9], %s1832_s4  ;;  %s223_s10 = scalar_lea.vmem (!%p2101_p6), [#allocation8], %s1835_s2 }
  0x71   : > { %1584 = dma.done.wait (%p2102_p10), %s220_s7, 128  }
  0x72   : > { %1586 = vsyncadd (%p2102_p10), %s220_s7, 4294967168  ;;  %s228_s22 = sand.u32 1, %s1687_s18   ;;  %s232_s19 = scalar_lea.vmem [#allocation11], %s1835_s2 }
  0x73   : > { %s229_s9 = scalar_lea.sflag [#allocation12], %s228_s22 }
  0x74   : > { %1588 = dma.done.wait (%p2102_p10), %s229_s9, 128  }
  0x75   : > { %1590 = vsyncadd (%p2102_p10), %s229_s9, 4294967168  ;;  %p2103_p13 = scmp.eq.s32.totalorder %s1687_s18, 0 }
  0x77   : > { %1592 = dma.done.wait (%p2103_p13), [#allocation12], 768   ;;  %p2104_p3 = pmov %p2103_p13 }
  0x78   : > { %vm287_vm0 = vcmask 261120   ;;  %v1628_v0 = vmov 0.0   ;;  %vm1629_vm1 = vmmov 0   ;;  %v1630_v1 = vmov 0   ;;  %v1411_v2 = vld [vmem:[#allocation13] ss:$12 sps:$4 sm:$0xff]  }
  0x79   : > { %1594 = vsyncadd (%p2104_p3), [#allocation12], 4294966528  ;;  %1266 = vmatprep.subr.bf16.mxu0 %v1628_v0  ;;  %1270 = vmatprep.mubr.msk.bf16.mxu0 %vm1629_vm1, %v1628_v0  ;;  %361 = vst.msk [vmem:[#allocation7] sm:$0xff] %vm287_vm0, %v1628_v0  ;;  %v1412_v3 = vld [vmem:[#allocation13 + $0x8] ss:$12 sps:$4 sm:$0xff]   ;;  %vm332_vm2 = vcmask 257024   ;;  %v674_v43 = vlaneseq }
  0x7a   : > { %362 = vst.msk [vmem:[#allocation7 + $0x8] sm:$0xff] %vm287_vm0, %v1628_v0  ;;  %363 = vst.msk [vmem:[#allocation7 + $0x10] sm:$0xff] %vm287_vm0, %v1628_v0  ;;  %431 = vmatprep.mubr.bf16.mxu1 %v1630_v1  ;;  %1409 = vset.pattern.permute.xlu1 %v1630_v1  ;;  %v1414_v4 = vld [vmem:[#allocation13 + $0x4] ss:$12 sps:$4 sm:$0xff]   ;;  %v1416_v6 = vld [vmem:[#allocation13 + $0x20] ss:$12 sps:$4 sm:$0xff]  }
  0x7b   : > { %364 = vst.msk [vmem:[#allocation7 + $0x18] sm:$0xff] %vm287_vm0, %v1628_v0  ;;  %1410 = vset.pattern.permute.xlu0 %v1630_v1  ;;  %1267 = vmatpush3.bf16.msra.mxu0 %v1411_v2  ;;  %v1415_v5 = vld [vmem:[#allocation13 + $0x18] ss:$12 sps:$4 sm:$0xff]   ;;  %v1418_v7 = vld [vmem:[#allocation13 + $0x1c] ss:$12 sps:$4 sm:$0xff]   ;;  %s1631_s18 = smov 96  }
  0x7c   : > { %399 = vmatprep.subr.bf16.mxu1 %v1412_v3  ;;  %1268 = vmatprep.subr.bf16.mxu0 %v1628_v0  ;;  %v269_v8 = vld [vmem:[%s223_s10] sm:$0xff]  ;;  %v369_v10 = vld [vmem:[%s232_s19] sm:$0xff]  ;;  %s1632_s20 = smov 32   ;;  %s1633_s5 = smov 64   ;;  %vm795_vm3 = vcmask 1043456   ;;  %v675_v44 = vshrl.u32 %v674_v43, 7 }
  0x7d   : > { %400 = vmatpush1.bf16.msra.mxu1 %v1414_v4  ;;  %v270_v9 = vpack.c.bf16 %v269_v8, %v269_v8  ;;  %v370_v11 = vpack.c.bf16 %v369_v10, %v369_v10  ;;  %v680_v45 = vand.u32 127, %v674_v43  ;;  %vm352_vm5 = vcmask 7168   ;;  %s263_s23 = scalar_lea.vmem [#allocation14], %s1835_s2  ;;  %s1241_s24 = sshll.u32 %s1613_s15, 7 }
  0x7e   : > { %401 = vmatprep.subr.bf16.mxu1 %v1416_v6  ;;  %vm694_vm6 = vcmask 64512   ;;  %v1634_v46 = vmov -1e+30   ;;  %357 = vst.msk [vmem:[#allocation6] sm:$0xff] %vm352_vm5, %v1628_v0  ;;  %358 = vst.msk [vmem:[#allocation6 + $0x8] sm:$0xff] %vm352_vm5, %v1628_v0  ;;  %vm1062_vm7 = vcmask 523520   ;;  %s2032_s28 = scalar_lea.hbm %s2084_s3, %s1241_s24 }
  0x7f   : > { %1269 = vmatpush3.bf16.msra.mxu0 %v1415_v5  ;;  %vm683_vm4 = vcmp.gt.s32.totalorder %v680_v45, %v675_v44  ;;  %353 = vst.msk [vmem:[#allocation5] sm:$0xff] %vm352_vm5, %v1634_v46  ;;  %354 = vst.msk [vmem:[#allocation5 + $0x8] sm:$0xff] %vm352_vm5, %v1634_v46  ;;  %vm1068_vm8 = vcmask 785920   ;;  %s1091_s30 = sshll.u32 %s263_s23, 4  ;;  %vm1074_vm9 = vcmask 1048320   ;;  %s1077_s6 = scalar_lea.sflag [#allocation10], %s1832_s4  ;;  %s2034_s30 = int_to_ptr.vmem [resolvable:$true] %s1091_s30 }
  0x80   : > { %1274 = vmatprep.subr.bf16.mxu0 %v1628_v0  ;;  %355 = vst.msk [vmem:[#allocation5 + $0x10] sm:$0xff] %vm352_vm5, %v1634_v46  ;;  %356 = vst.msk [vmem:[#allocation5 + $0x18] sm:$0xff] %vm352_vm5, %v1634_v46  ;;  %s1531_s8 = scalar_lea.vmem %s2034_s30, 128  ;;  %p2105_p0 = scmp.ne.s32.totalorder %s2099_s25, 0 }
  0x81   : > { %402 = vmatpush1.bf16.msra.mxu1 %v1418_v7  ;;  %359 = vst.msk [vmem:[#allocation6 + $0x10] sm:$0xff] %vm352_vm5, %v1628_v0  ;;  %360 = vst.msk [vmem:[#allocation6 + $0x18] sm:$0xff] %vm352_vm5, %v1628_v0  ;;  %p1532_p12 = scmp.ne.s32.totalorder %s2034_s30, %s1531_s8  ;;  %s1635_s15 = smov [#allocation14]  }
  0x82   : > { %1271 = vmatmul.mubr.msk.bf16.vlgmr.msra.gmra.mrb[0].mxu0 %vm287_vm0, %v270_v9  ;;  %1280 = vmatprep.subr.bf16.mxu1 %v1628_v0  ;;  %s1535_s27 = sshll.u32 %s1635_s15, 4  ;;  %s1536_s27 = int_to_ptr.vmem [resolvable:$false] %s1535_s27 }
  0x83   : > { %1276 = vmatprep.mubr.msk.bf16.mxu0 %vm1629_vm1, %v1628_v0  ;;  %p1533_p5 = pnand %p1532_p12, %p2105_p0  ;;  %s1537_s2 = scalar_lea.vmem %s1536_s27, 256 }
  0x84   : > { %1229 = vmatmul.mubr.msk.bf16.vlgmr.msra.gmra.mrb[0].mxu1 %vm287_vm0, %v370_v11  ;;  %p1538_p1 = scmp.lt.s32.totalorder %s2034_s30, %s1536_s27  ;;  %p1539_p2 = scmp.lt.s32.totalorder %s1537_s2, %s1531_s8 }
  0x85   : > { %1282 = vmatprep.mubr.msk.bf16.mxu1 %vm1629_vm1, %v1628_v0  ;;  %p1534_p9 = pneg %p1533_p5 }
  0x86   : > { %v1935_v8 = vld [vmem:[#allocation5] sm:$0xff]  ;;  %p1540_p7 = por %p1539_p2, %p1538_p1 }
  0x88   : > { %p1541_p4 = pnand %p1540_p7, %p1534_p9 }
 0x155   : > { %v325_v12 = vpop.f32.mrb[0].mxu0 }
 0x156   : > { %v331_v13 = vpack.c.bf16 %v325_v12, %v325_v12  ;;  %v1272_v14 = vpop.f32.mrb[1].mxu0  ;;  %v1945_v12 = vld [vmem:[#allocation5 + $0x8] sm:$0xff] }
 0x157   : > { %v433_v15 = vpop.f32.mrb[0].mxu1  ;;  %v328_v16 = vpop.f32.mrb[2].mxu0 }
 0x158   : > { %333 = vst.msk [vmem:[#allocation2] sm:$0xf] %vm332_vm2, %v331_v13  ;;  %v440_v17 = vpack.c.bf16 %v433_v15, %v433_v15  ;;  %v435_v18 = vpop.f32.mrb[1].mxu1  ;;  %337 = vrot.lane.b32.xlu1 %v331_v13, %s1631_s18  ;;  %v1273_v19 = vpop.f32.mrb[3].mxu0  ;;  %v1950_v15 = vld [vmem:[#allocation5 + $0x10] sm:$0xff] }
 0x159   : > { %v1877_v20 = vpack.c.bf16 %v435_v18, %v435_v18  ;;  %v437_v21 = vpop.f32.mrb[2].mxu1  ;;  %v1960_v19 = vld [vmem:[#allocation5 + $0x18] sm:$0xff] }
 0x15a   : > { %443 = vst.msk [vmem:[#allocation3] sm:$0xf] %vm332_vm2, %v440_v17  ;;  %448 = vrot.lane.b32.xlu0 %v440_v17, %s1631_s18  ;;  %v438_v22 = vpop.f32.mrb[3].mxu1 }
 0x15b   : > { %444 = vst.msk [vmem:[#allocation4] sm:$0xf] %vm332_vm2, %v1877_v20 }
 0x15c   : > { %471 = vrot.lane.b32.xlu1 %v440_v17, %s1632_s20 }
 0x15e   : > { %461 = vrot.lane.b32.xlu0 %v440_v17, %s1633_s5 }
 0x15f   : > { %v481_v25 = vld [vmem:[#allocation2] sm:$0xf] }
 0x160   : > { %347 = vrot.lane.b32.xlu1 %v331_v13, %s1632_s20 }
 0x161   : > { %v485_v23 = vld [vmem:[#allocation3] sm:$0xf] }
 0x162   : > { %342 = vrot.lane.b32.xlu0 %v331_v13, %s1633_s5  ;;  %v493_v24 = vsel %vm287_vm0, %v485_v23, 0  ;;  %v788_v39 = vld [vmem:[#allocation4] sm:$0xf] }
 0x163   : > { %1275 = vmatpush3.bf16.xpose.msra.mxu0 %v493_v24  ;;  %v797_v41 = vsel %vm795_vm3, %v788_v39, 0 }
 0x164   : > { %1286 = vmatprep.subr.bf16.mxu0 %v1628_v0 }
 0x16a   : > { %1277 = vmatmul.mubr.msk.bf16.vlgmr.msra.gmra.mrb[4].mxu0 %vm287_vm0, %v481_v25 }
 0x16b   : > { %1288 = vmatprep.mubr.msk.bf16.mxu0 %vm1629_vm1, %v1628_v0 }
 0x1ca   : > { %v338_v26 = vpop.permute.xlu1 %337 }
 0x1cb   : > { %341 = vst.msk [vmem:[#allocation2 + $0x4] sm:$0xf] %vm332_vm2, %v338_v26 }
 0x1cc   : > { %v449_v27 = vpop.permute.xlu0 %448 }
 0x1cd   : > { %452 = vst.msk [vmem:[#allocation3 + $0x4] sm:$0xf] %vm332_vm2, %v449_v27 }
 0x1ce   : > { %v472_v28 = vpop.permute.xlu1 %471 }
 0x1cf   : > { %475 = vst.msk [vmem:[#allocation3 + $0xc] sm:$0xf] %vm332_vm2, %v472_v28 }
 0x1d0   : > { %v462_v29 = vpop.permute.xlu0 %461 }
 0x1d1   : > { %465 = vst.msk [vmem:[#allocation3 + $0x8] sm:$0xf] %vm332_vm2, %v462_v29 }
 0x1d2   : > { %v348_v30 = vpop.permute.xlu1 %347  ;;  %v482_v37 = vld [vmem:[#allocation2 + $0x4] sm:$0xf] }
 0x1d3   : > { %351 = vst.msk [vmem:[#allocation2 + $0xc] sm:$0xf] %vm332_vm2, %v348_v30 }
 0x1d4   : > { %v343_v31 = vpop.permute.xlu0 %342  ;;  %v486_v32 = vld [vmem:[#allocation3 + $0x4] sm:$0xf] }
 0x1d5   : > { %346 = vst.msk [vmem:[#allocation2 + $0x8] sm:$0xf] %vm332_vm2, %v343_v31  ;;  %v539_v33 = vsel %vm287_vm0, %v486_v32, 0 }
 0x1d6   : > { %1281 = vmatpush3.bf16.xpose.msra.mxu1 %v539_v33  ;;  %v488_v36 = vld [vmem:[#allocation3 + $0xc] sm:$0xf] }
 0x1d7   : > { %1292 = vmatprep.subr.bf16.mxu1 %v1628_v0  ;;  %v631_v38 = vsel %vm287_vm0, %v488_v36, 0 }
 0x1d8   : > { %v487_v34 = vld [vmem:[#allocation3 + $0x8] sm:$0xf] }
 0x1d9   : > { %v585_v35 = vsel %vm287_vm0, %v487_v34, 0 }
 0x1da   : > { %1287 = vmatpush3.bf16.xpose.msra.mxu0 %v585_v35  ;;  %v484_v42 = vld [vmem:[#allocation2 + $0xc] sm:$0xf] }
 0x1db   : > { %1298 = vmatprep.subr.bf16.mxu0 %v1628_v0 }
 0x1dc   : > { %v483_v40 = vld [vmem:[#allocation2 + $0x8] sm:$0xf] }
 0x1dd   : > { %1283 = vmatmul.mubr.msk.bf16.vlgmr.msra.gmra.mrb[4].mxu1 %vm287_vm0, %v482_v37 }
 0x1de   : > { %1293 = vmatpush3.bf16.xpose.msra.mxu1 %v631_v38  ;;  %1294 = vmatprep.mubr.msk.bf16.mxu1 %vm1629_vm1, %v1628_v0 }
 0x1df   : > { %1304 = vmatprep.subr.bf16.mxu1 %v1628_v0 }
 0x1e1   : > { %1289 = vmatmul.mubr.msk.bf16.vlgmr.msra.gmra.mrb[8].mxu0 %vm287_vm0, %v483_v40 }
 0x1e2   : > { %1299 = vmatpush3.bf16.msra.mxu0 %v797_v41  ;;  %1300 = vmatprep.mubr.msk.bf16.mxu0 %vm1629_vm1, %v1628_v0 }
 0x1e3   : > { %1310 = vmatprep.subr.bf16.mxu0 %v1628_v0 }
 0x1e5   : > { %1295 = vmatmul.mubr.msk.bf16.vlgmr.msra.gmra.mrb[8].mxu1 %vm287_vm0, %v484_v42 }
 0x1e6   : > { %1306 = vmatprep.mubr.msk.bf16.mxu1 %vm1629_vm1, %v1628_v0 }
 0x23d   : > { %v529_v47 = vpop.f32.mrb[4].mxu0 }
 0x23e   : > { %v686_v48 = vsel %vm683_vm4, -1e+30, %v529_v47  ;;  %v1278_v49 = vpop.f32.mrb[5].mxu0 }
 0x23f   : > { %v532_v50 = vpop.f32.mrb[6].mxu0  ;;  %v695_v51 = vsel %vm694_vm6, %v686_v48, -inf }
 0x240   : > { %696 = vmax.xlane.f32.xlu0 %v695_v51  ;;  %v1279_v52 = vpop.f32.mrb[7].mxu0 }
 0x2b0   : > { %v575_v53 = vpop.f32.mrb[4].mxu1 }
 0x2b1   : > { %v687_v54 = vsel %vm683_vm4, -1e+30, %v575_v53  ;;  %v1284_v55 = vpop.f32.mrb[5].mxu1 }
 0x2b2   : > { %v578_v56 = vpop.f32.mrb[6].mxu1  ;;  %v698_v57 = vsel %vm694_vm6, %v687_v54, -inf }
 0x2b3   : > { %699 = vmax.xlane.f32.xlu1 %v698_v57  ;;  %v1285_v58 = vpop.f32.mrb[7].mxu1 }
 0x2b4   : > { %v621_v59 = vpop.f32.mrb[8].mxu0 }
 0x2b5   : > { %v688_v60 = vsel %vm683_vm4, -1e+30, %v621_v59  ;;  %v1290_v61 = vpop.f32.mrb[9].mxu0 }
 0x2b6   : > { %v624_v62 = vpop.f32.mrb[10].mxu0  ;;  %v701_v63 = vsel %vm694_vm6, %v688_v60, -inf }
 0x2b7   : > { %702 = vmax.xlane.f32.xlu0 %v701_v63  ;;  %v1291_v1 = vpop.f32.mrb[11].mxu0 }
 0x2b8   : > { %v667_v2 = vpop.f32.mrb[8].mxu1 }
 0x2b9   : > { %v689_v3 = vsel %vm683_vm4, -1e+30, %v667_v2  ;;  %v1296_v4 = vpop.f32.mrb[9].mxu1 }
 0x2ba   : > { %v670_v5 = vpop.f32.mrb[10].mxu1  ;;  %v704_v6 = vsel %vm694_vm6, %v689_v3, -inf  ;;  %v756_v4 = vld [vmem:[#allocation6 + $0x8] sm:$0xff] }
 0x2bb   : > { %v1297_v7 = vpop.f32.mrb[11].mxu1  ;;  %705 = vmax.xlane.f32.xlu0 %v704_v6 }
 0x2bc   : > { %v757_v7 = vld [vmem:[#allocation6 + $0x10] sm:$0xff] }
 0x2cd   : > { %v697_v9 = vpop.xlane.xlu0 %696 }
 0x2ce   : > { %v1938_v10 = vmax.f32 %v1935_v8, %v697_v9 }
 0x2d0   : > { %v711_v11 = vsub.f32 %v1935_v8, %v1938_v10  ;;  %1013 = vst.msk [vmem:[#allocation5] sm:$0xff] %vm352_vm5, %v1938_v10  ;;  %725 = vperm.xlu1 %1409, %v1938_v10  }
 0x340   : > { %v700_v13 = vpop.xlane.xlu1 %699 }
 0x341   : > { %v1948_v14 = vmax.f32 %v1945_v12, %v700_v13 }
 0x343   : > { %v712_v16 = vsub.f32 %v1945_v12, %v1948_v14  ;;  %1014 = vst.msk [vmem:[#allocation5 + $0x8] sm:$0xff] %vm352_vm5, %v1948_v14  ;;  %730 = vperm.xlu0 %1410, %v1948_v14   ;;  %v758_v14 = vld [vmem:[#allocation6 + $0x18] sm:$0xff] }
 0x344   : > { %v703_v17 = vpop.xlane.xlu0 %702 }
 0x345   : > { %v1958_v18 = vmax.f32 %v1950_v15, %v703_v17  ;;  %v717_v53 = vmul.f32 1.442695, %v712_v16 }
 0x347   : > { %v713_v21 = vsub.f32 %v1950_v15, %v1958_v18  ;;  %1015 = vst.msk [vmem:[#allocation5 + $0x10] sm:$0xff] %vm352_vm5, %v1958_v18  ;;  %735 = vperm.xlu1 %1409, %v1958_v18  }
 0x348   : > { %v706_v22 = vpop.xlane.xlu0 %705 }
 0x349   : > { %v1968_v23 = vmax.f32 %v1960_v19, %v706_v22  ;;  %v719_v57 = vmul.f32 1.442695, %v713_v21 }
 0x34b   : > { %v714_v24 = vsub.f32 %v1960_v19, %v1968_v23  ;;  %1016 = vst.msk [vmem:[#allocation5 + $0x18] sm:$0xff] %vm352_vm5, %v1968_v23  ;;  %740 = vperm.xlu1 %1409, %v1968_v23   ;;  %v755_v19 = vld [vmem:[#allocation6] sm:$0xff] }
 0x34f   : > { %v726_v25 = vpop.permute.xlu1 %725  ;;  %456 = vrot.lane.b32.xlu1 %v1877_v20, %s1631_s18 }
 0x350   : > { %v743_v26 = vsub.f32 %v686_v48, %v726_v25 }
 0x352   : > { %v747_v27 = vmul.f32 1.442695, %v743_v26 }
 0x353   : > { %466 = vrot.lane.b32.xlu1 %v1877_v20, %s1633_s5 }
 0x354   : > { %1419 = vpow2.f32 %v747_v27 }
 0x357   : > { %476 = vrot.lane.b32.xlu1 %v1877_v20, %s1632_s20 }
 0x35e   : > { %v1420_v28 = vpop.eup %1419 }
 0x35f   : > { %v784_v29 = vpack.c.bf16 %v1420_v28, %v1420_v28 }
 0x361   : > { %1301 = vmatmul.mubr.msk.bf16.vlgmr.msra.gmra.mrb[12].mxu0 %vm694_vm6, %v784_v29 }
 0x362   : > { %1312 = vmatprep.mubr.msk.bf16.mxu0 %vm1629_vm1, %v1628_v0 }
 0x3c2   : > { %v731_v30 = vpop.permute.xlu0 %730 }
 0x3c3   : > { %v744_v31 = vsub.f32 %v687_v54, %v731_v30  ;;  %v763_v54 = vsel %vm694_vm6, %v1420_v28, 0.0  ;;  %v978_v30 = vld [vmem:[#allocation7 + $0x8] sm:$0xff] }
 0x3c5   : > { %v749_v32 = vmul.f32 1.442695, %v744_v31 }
 0x3c6   : > { %v736_v33 = vpop.permute.xlu1 %735 }
 0x3c7   : > { %1421 = vpow2.f32 %v749_v32  ;;  %v745_v34 = vsub.f32 %v688_v60, %v736_v33 }
 0x3c9   : > { %v751_v35 = vmul.f32 1.442695, %v745_v34  ;;  %v979_v34 = vld [vmem:[#allocation7 + $0x10] sm:$0xff] }
 0x3ca   : > { %v741_v36 = vpop.permute.xlu1 %740 }
 0x3cb   : > { %1423 = vpow2.f32 %v751_v35  ;;  %v746_v37 = vsub.f32 %v689_v3, %v741_v36  ;;  %v715_v3 = vmul.f32 1.442695, %v711_v11 }
 0x3cd   : > { %v753_v38 = vmul.f32 1.442695, %v746_v37 }
 0x3ce   : > { %v457_v39 = vpop.permute.xlu1 %456 }
 0x3cf   : > { %1425 = vpow2.f32 %v753_v38  ;;  %460 = vst.msk [vmem:[#allocation4 + $0x4] sm:$0xf] %vm332_vm2, %v457_v39 }
 0x3d0   : > { %1427 = vpow2.f32 %v717_v53 }
 0x3d1   : > { %v1422_v20 = vpop.eup %1421  ;;  %1429 = vpow2.f32 %v719_v57 }
 0x3d2   : > { %v467_v40 = vpop.permute.xlu1 %466  ;;  %v766_v41 = vsel %vm694_vm6, %v1422_v20, 0.0  ;;  %v785_v48 = vpack.c.bf16 %v1422_v20, %v1422_v20 }
 0x3d3   : > { %470 = vst.msk [vmem:[#allocation4 + $0x8] sm:$0xf] %vm332_vm2, %v467_v40  ;;  %767 = vadd.xlane.f32.xlu1 %v766_v41  ;;  %v980_v40 = vld [vmem:[#allocation7 + $0x18] sm:$0xff] }
 0x3d5   : > { %v1424_v42 = vpop.eup %1423 }
 0x3d6   : > { %v477_v43 = vpop.permute.xlu1 %476  ;;  %v769_v44 = vsel %vm694_vm6, %v1424_v42, 0.0  ;;  %v789_v45 = vld [vmem:[#allocation4 + $0x4] sm:$0xf]  ;;  %v786_v52 = vpack.c.bf16 %v1424_v42, %v1424_v42 }
 0x3d7   : > { %480 = vst.msk [vmem:[#allocation4 + $0xc] sm:$0xf] %vm332_vm2, %v477_v43  ;;  %770 = vadd.xlane.f32.xlu0 %v769_v44  ;;  %v843_v46 = vsel %vm795_vm3, %v789_v45, 0 }
 0x3d8   : > { %1305 = vmatpush3.bf16.msra.mxu1 %v843_v46 }
 0x3d9   : > { %v1426_v47 = vpop.eup %1425  ;;  %1316 = vmatprep.subr.bf16.mxu1 %v1628_v0 }
 0x3da   : > { %v772_v49 = vsel %vm694_vm6, %v1426_v47, 0.0  ;;  %v790_v50 = vld [vmem:[#allocation4 + $0x8] sm:$0xf]  ;;  %v787_v58 = vpack.c.bf16 %v1426_v47, %v1426_v47  ;;  %v1428_v59 = vpop.eup %1427 }
 0x3db   : > { %1307 = vmatmul.mubr.msk.bf16.vlgmr.msra.gmra.mrb[12].mxu1 %vm694_vm6, %v785_v48  ;;  %773 = vadd.xlane.f32.xlu1 %v772_v49  ;;  %v889_v51 = vsel %vm795_vm3, %v790_v50, 0  ;;  %v1430_v60 = vpop.eup %1429  ;;  %v760_v5 = vmul.f32 %v1428_v59, %v756_v4 }
 0x3dc   : > { %1311 = vmatpush3.bf16.msra.mxu0 %v889_v51  ;;  %1318 = vmatprep.mubr.msk.bf16.mxu1 %vm1629_vm1, %v1628_v0  ;;  %v721_v0 = vmul.f32 1.442695, %v714_v24  ;;  %v761_v12 = vmul.f32 %v1430_v60, %v757_v7 }
 0x3de   : > { %v791_v55 = vld [vmem:[#allocation4 + $0xc] sm:$0xf]  ;;  %1431 = vpow2.f32 %v721_v0  ;;  %v977_v0 = vld [vmem:[#allocation7] sm:$0xff] }
 0x3df   : > { %1313 = vmatmul.mubr.msk.bf16.vlgmr.msra.gmra.mrb[16].mxu0 %vm694_vm6, %v786_v52  ;;  %764 = vadd.xlane.f32.xlu1 %v763_v54  ;;  %v935_v56 = vsel %vm795_vm3, %v791_v55, 0  ;;  %1433 = vpow2.f32 %v715_v3 }
 0x3e0   : > { %1317 = vmatpush3.bf16.msra.mxu1 %v935_v56 }
 0x3e3   : > { %1319 = vmatmul.mubr.msk.bf16.vlgmr.msra.gmra.mrb[16].mxu1 %vm694_vm6, %v787_v58 }
 0x3e8   : > { %v1432_v61 = vpop.eup %1431 }
 0x3e9   : > { %v762_v16 = vmul.f32 %v1432_v61, %v758_v14  ;;  %v1434_v17 = vpop.eup %1433 }
 0x3ea   : > { %v759_v11 = vmul.f32 %v1434_v17, %v755_v19 }
 0x3ed   : > { %988 = vperm.xlu0 %1410, %v1428_v59  }
 0x3f0   : > { %993 = vperm.xlu1 %1409, %v1430_v60  }
 0x3f4   : > { %998 = vperm.xlu1 %1409, %v1432_v61  }
 0x434   : > { %v2009_v62 = vpop.f32.mrb[12].mxu0 }
 0x435   : > { %v1302_v63 = vpop.f32.mrb[13].mxu0 }
 0x436   : > { %v836_v1 = vpop.f32.mrb[14].mxu0 }
 0x437   : > { %v1303_v2 = vpop.f32.mrb[15].mxu0 }
 0x460   : > { %v768_v6 = vpop.xlane.xlu1 %767 }
 0x461   : > { %v776_v9 = vadd.f32 %v768_v6, %v760_v5 }
 0x463   : > { %781 = vst.msk [vmem:[#allocation6 + $0x8] sm:$0xff] %vm352_vm5, %v776_v9 }
 0x464   : > { %v771_v13 = vpop.xlane.xlu0 %770 }
 0x465   : > { %v777_v15 = vadd.f32 %v771_v13, %v761_v12 }
 0x467   : > { %782 = vst.msk [vmem:[#allocation6 + $0x10] sm:$0xff] %vm352_vm5, %v777_v15 }
 0x468   : > { %v774_v18 = vpop.xlane.xlu1 %773 }
 0x469   : > { %v778_v8 = vadd.f32 %v774_v18, %v762_v16 }
 0x46a   : > { %v1025_v10 = vld [vmem:[#allocation6 + $0x8] sm:$0xff] }
 0x46b   : > { %783 = vst.msk [vmem:[#allocation6 + $0x18] sm:$0xff] %vm352_vm5, %v778_v8  ;;  %1435 = vrcp.f32 %v1025_v10 }
 0x46c   : > { %v765_v21 = vpop.xlane.xlu1 %764  ;;  %v989_v31 = vpop.permute.xlu0 %988 }
 0x46d   : > { %v775_v22 = vadd.f32 %v765_v21, %v759_v11  ;;  %v1002_v33 = vmul.f32 %v989_v31, %v978_v30 }
 0x46e   : > { %v1026_v23 = vld [vmem:[#allocation6 + $0x10] sm:$0xff] }
 0x46f   : > { %780 = vst.msk [vmem:[#allocation6] sm:$0xff] %vm352_vm5, %v775_v22  ;;  %1437 = vrcp.f32 %v1026_v23 }
 0x470   : > { %v994_v32 = vpop.permute.xlu1 %993 }
 0x471   : > { %v1003_v39 = vmul.f32 %v994_v32, %v979_v34 }
 0x472   : > { %v1027_v24 = vld [vmem:[#allocation6 + $0x18] sm:$0xff] }
 0x473   : > { %1439 = vrcp.f32 %v1027_v24 }
 0x474   : > { %v999_v41 = vpop.permute.xlu1 %998 }
 0x475   : > { %v1436_v25 = vpop.eup %1435  ;;  %v1004_v46 = vmul.f32 %v999_v41, %v980_v40 }
 0x476   : > { %1039 = vperm.xlu0 %1410, %v1436_v25   ;;  %v1024_v26 = vld [vmem:[#allocation6] sm:$0xff] }
 0x477   : > { %1441 = vrcp.f32 %v1024_v26 }
 0x479   : > { %v1438_v27 = vpop.eup %1437 }
 0x47a   : > { %1044 = vperm.xlu1 %1409, %v1438_v27  }
 0x47d   : > { %v1440_v28 = vpop.eup %1439 }
 0x47e   : > { %1049 = vperm.xlu0 %1410, %v1440_v28   ;;  %983 = vperm.xlu1 %1409, %v1434_v17  }
 0x481   : > { %v1442_v29 = vpop.eup %1441 }
 0x482   : > { %1034 = vperm.xlu0 %1410, %v1442_v29  }
 0x4ae   : > { %v879_v35 = vpop.f32.mrb[12].mxu1 }
 0x4af   : > { %v1006_v36 = vadd.f32 %v1002_v33, %v879_v35  ;;  %v1308_v37 = vpop.f32.mrb[13].mxu1 }
 0x4b0   : > { %v882_v38 = vpop.f32.mrb[14].mxu1 }
 0x4b1   : > { %1010 = vst.msk [vmem:[#allocation7 + $0x8] sm:$0xff] %vm287_vm0, %v1006_v36  ;;  %v1309_v20 = vpop.f32.mrb[15].mxu1 }
 0x4b2   : > { %v925_v42 = vpop.f32.mrb[16].mxu0 }
 0x4b3   : > { %v1007_v43 = vadd.f32 %v1003_v39, %v925_v42  ;;  %v1314_v44 = vpop.f32.mrb[17].mxu0 }
 0x4b4   : > { %v928_v45 = vpop.f32.mrb[18].mxu0 }
 0x4b5   : > { %1011 = vst.msk [vmem:[#allocation7 + $0x10] sm:$0xff] %vm287_vm0, %v1007_v43  ;;  %v1315_v47 = vpop.f32.mrb[19].mxu0 }
 0x4b6   : > { %v971_v48 = vpop.f32.mrb[16].mxu1 }
 0x4b7   : > { %v1008_v49 = vadd.f32 %v1004_v46, %v971_v48  ;;  %v1320_v50 = vpop.f32.mrb[17].mxu1 }
 0x4b8   : > { %v974_v51 = vpop.f32.mrb[18].mxu1  ;;  %v1021_v53 = vld [vmem:[#allocation7 + $0x8] sm:$0xff] }
 0x4b9   : > { %1012 = vst.msk [vmem:[#allocation7 + $0x18] sm:$0xff] %vm287_vm0, %v1008_v49  ;;  %v1321_v52 = vpop.f32.mrb[19].mxu1 }
 0x4bc   : > { %v1022_v57 = vld [vmem:[#allocation7 + $0x10] sm:$0xff] }
 0x4c0   : > { %v1023_v60 = vld [vmem:[#allocation7 + $0x18] sm:$0xff] }
 0x4f5   : > { %v1040_v54 = vpop.permute.xlu0 %1039 }
 0x4f6   : > { %v1053_v55 = vmul.f32 %v1040_v54, %v1021_v53 }
 0x4f8   : > { %1059 = vrot.lane.b32.xlu1 %v1053_v55, %s1632_s20 }
 0x4f9   : > { %v1045_v56 = vpop.permute.xlu1 %1044 }
 0x4fa   : > { %v1054_v58 = vmul.f32 %v1045_v56, %v1022_v57 }
 0x4fc   : > { %1065 = vrot.lane.b32.xlu0 %v1054_v58, %s1633_s5 }
 0x4fd   : > { %v984_v59 = vpop.permute.xlu1 %983  ;;  %v1050_v61 = vpop.permute.xlu0 %1049 }
 0x4fe   : > { %v1001_v63 = vmul.f32 %v984_v59, %v977_v0  ;;  %v1055_v1 = vmul.f32 %v1050_v61, %v1023_v60 }
 0x500   : > { %v1005_v2 = vadd.f32 %v1001_v63, %v2009_v62  ;;  %1071 = vrot.lane.b32.xlu1 %v1055_v1, %s1631_s18 }
 0x501   : > { %v1035_v3 = vpop.permute.xlu0 %1034 }
 0x502   : > { %1009 = vst.msk [vmem:[#allocation7] sm:$0xff] %vm287_vm0, %v1005_v2 }
 0x509   : > { %v1020_v4 = vld [vmem:[#allocation7] sm:$0xff] }
 0x50a   : > { %v1052_v5 = vmul.f32 %v1035_v3, %v1020_v4 }
 0x50c   : > { %1057 = vst.msk [vmem:[%s263_s23] sm:$0xff] %vm287_vm0, %v1052_v5 }
 0x56a   : > { %v1060_v6 = vpop.permute.xlu1 %1059 }
 0x56b   : > { %1063 = vst.msk [vmem:[%s263_s23] sm:$0xff] %vm1062_vm7, %v1060_v6 }
 0x56e   : > { %v1066_v7 = vpop.permute.xlu0 %1065 }
 0x56f   : > { %1069 = vst.msk [vmem:[%s263_s23] sm:$0xff] %vm1068_vm8, %v1066_v7 }
 0x572   : > { %v1072_v62 = vpop.permute.xlu1 %1071 }
 0x573   : > { %1075 = vst.msk [vmem:[%s263_s23] sm:$0xff] %vm1074_vm9, %v1072_v62 }
 0x574   : > { %1544 = shalt.err (!%p1541_p4)
}
 0x575   : > { %s1545_s4 = scalar_lea.hbm %s2032_s28, 128  ;;  %s1549_s22 = scalar_lea.hbm %s2084_s3, 256 }
 0x576   : > { %p1546_p8 = scmp.ne.s32.totalorder %s2032_s28, %s1545_s4  ;;  %p1550_p10 = scmp.lt.u32.totalorder %s2032_s28, %s2084_s3 }
 0x577   : > { %p1551_p13 = scmp.lt.u32.totalorder %s1549_s22, %s1545_s4  ;;  %p1553_p12 = scmp.lt.u32.totalorder %s1545_s4, %s2032_s28 }
 0x578   : > { %p1547_p11 = pnand %p1546_p8, %p2105_p0 }
 0x579   : > { %p1552_p3 = por %p1551_p13, %p1550_p10 }
 0x57a   : > { %p1548_p6 = pneg %p1547_p11 }
 0x57b   : > { %p1554_p5 = por %p1553_p12, %p1552_p3 }
 0x57d   : > { %p1555_p9 = pnand %p1554_p5, %p1548_p6 }
 0x57f   : > { %1558 = shalt.err (!%p1555_p9)
}
 0x580   : > { %1330 = dma.vmem_to_hbm [thread:$0]  (%p2105_p0), %s2034_s30, 128, %s2032_s28, %s1077_s6  }
 0x581 PF: > { %s1103_s18 = sand.u32 1, %s1601_s12   ;;  %p2106_p1 = scmp.ne.s32.totalorder %s2092_s21, 0 }
 0x582   : > { %p2107_p2 = scmp.ge.s32.totalorder %s1621_s17, 2  ;;  %s1104_s20 = scalar_lea.sflag [#allocation10], %s1103_s18 }
 0x584   : > { %p1344_p7 = pnand %p2107_p2, %p2106_p1 }
 0x586   : > { %1596 = dma.done.wait (!%p1344_p7), %s1104_s20, 128  }
 0x587   : > { %1598 = vsyncadd (!%p1344_p7), %s1104_s20, 4294967168  ;;  %s22_s17 = sadd.s32 1, %s1621_s17   ;;  %s2108_s25 = sld [smem:[#allocation19_spill]] }
 0x588   : > { %p19_p4 = scmp.ge.s32.totalorder %s22_s17, 4   ;;  %s2109_s12 = smov %s1605_s13 }
 0x589   : > { %s2110_s13 = smov %s1609_s14  ;;  %s2111_s14 = smov %s1759_s29 }
 0x58a   : > { %s2112_s15 = smov %s1617_s16  ;;  %21 = sbr.rel (!%p19_p4) target bundleno = 10 (0xa), region = 115 }
 0x58d   : > { %s2113_s16 = smov %s2108_s25 }
 0x591   :  { %1109 = vsyncpa [#allocation9], 1 }
 0x592   :  { %1111 = vsyncpa [#allocation9 + $0x1], 1 }
 0x593   :  { %1112 = vsyncpa [#allocation12], 1 }
 0x594   :  { %1114 = vsyncpa [#allocation12 + $0x1], 1 }
 0x595   :  { %1115 = vsyncpa [#allocation10], 1 }
 0x596   :  { %1117 = vsyncpa [#allocation10 + $0x1], 1 }

// kernel: tpu_custom_call.1
= control target key start
LH: loop header
LB: loop body
LE: loop exit
PB: predicated region body
PF: predicated region fallthrough
CT: control target
= control target key end

     0   :  { %s2081_s0 = inlined_call_operand.hbm [shape: f32[2,8,32], index: 0, kind: input, shape index: {}]   ;;  %s2082_s1 = inlined_call_operand.hbm [shape: f32[2,8,32], index: 1, kind: input, shape index: {}]   ;;  %s2083_s2 = inlined_call_operand.hbm [shape: bf16[32,384], index: 2, kind: input, shape index: {}]   ;;  %s2084_s3 = inlined_call_operand.hbm [shape: f32[2,8,128], index: 3, kind: output, shape index: {}]  }
   0x1   :  { %2090 = sst [smem:[#allocation20_spill]] %s2083_s2 }
   0x2   :  { %8 = vsyncpa [#allocation9], 0 }
   0x3   :  { %10 = vsyncpa [#allocation9 + $0x1], 0 }
   0x4   :  { %11 = vsyncpa [#allocation12], 0 }
   0x5   :  { %13 = vsyncpa [#allocation12 + $0x1], 0 }
   0x6   :  { %14 = vsyncpa [#allocation10], 0 }
   0x7   :  { %16 = vsyncpa [#allocation10 + $0x1], 0  ;;  %s1656_s12 = smov 0   ;;  %s1658_s13 = smov 0  }
   0x8   :  { %s1660_s14 = smov 0   ;;  %s1662_s15 = smov 0  }
   0x9   :  { %s1664_s16 = smov 0   ;;  %s1666_s17 = smov 0  }
   0xa LB: > { %s1687_s18 = sadd.s32 4294967295, %s1621_s17   ;;  %s1208_s19 = sadd.s32 4294967294, %s1621_s17   ;;  %s1621_s17 = sphi %s1666_s17, %s22_s17   ;;  %s1617_s16 = sphi %s1664_s16, %s2113_s16   ;;  %s1613_s15 = sphi %s1662_s15, %s2112_s15   ;;  %s1609_s14 = sphi %s1660_s14, %s2111_s14   ;;  %s1605_s13 = sphi %s1658_s13, %s2110_s13   ;;  %s1601_s12 = sphi %s1656_s12, %s2109_s12  }
   0xb   : > { %p63_p0 = scmp.ne.s32.totalorder %s1605_s13, %s1601_s12  ;;  %p2085_p1 = scmp.eq.s32.totalorder %s1687_s18, 0 }
   0xc   : > { %p144_p3 = scmp.eq.s32.totalorder %s1208_s19, 1  ;;  %p1209_p5 = scmp.ge.s32.totalorder %s1621_s17, 1 }
   0xd   : > { %p1696_p4 = por %p2085_p1, %p63_p0  ;;  %p151_p7 = scmp.lt.s32.totalorder %s1621_s17, 3 }
   0xe   : > { %p1701_p6 = por %p144_p3, %p63_p0  ;;  %s1623_s23 = smov [#allocation13]  }
   0xf   : > { %s2091_s20 = scalar_select %p1696_p4, 1, 0 }
  0x10   : > { %s2092_s21 = scalar_select %p1701_p6, 1, 0 }
  0x11   : > { %p1706_p8 = pnand %p1209_p5, %p151_p7  ;;  %s163_s24 = sshll.u32 %s1623_s23, 4  ;;  %s164_s24 = int_to_ptr.vmem [resolvable:$true] %s163_s24 }
  0x12   : > { %s41_s26 = sadd.s32 1, %s1617_s16  ;;  %s2095_s2 = sld [smem:[#allocation20_spill]] }
  0x13   : > { %s2093_s22 = scalar_select %p1706_p8, 1, 0 }
  0x14   : > { %p1332_p9 = pneg %p1706_p8 }
  0x16   : > { %p1715_p11 = pnand %p1332_p9, %p2085_p1 }
  0x18   : > { %s1443_s29 = scalar_lea.hbm %s2095_s2, 768  ;;  %p1445_p13 = pneg %p1715_p11 }
  0x19   : > { %p1444_p12 = scmp.ne.s32.totalorder %s2095_s2, %s1443_s29  ;;  %p1450_p5 = scmp.lt.u32.totalorder %s1443_s29, %s2095_s2 }
  0x1b   : > { %p1446_p0 = pnand %p1445_p13, %p1444_p12 }
  0x1d   : > { %p1447_p3 = pneg %p1446_p0 }
  0x1f   : > { %p1452_p7 = pnand %p1450_p5, %p1447_p3 }
  0x21   : > { %1455 = shalt.err (!%p1452_p7)
}
  0x22   : > { %s1456_s7 = scalar_lea.vmem %s164_s24, 768  ;;  %p1464_p2 = scmp.lt.s32.totalorder %s164_s24, %s164_s24 }
  0x23   : > { %p1457_p9 = scmp.ne.s32.totalorder %s164_s24, %s1456_s7  ;;  %p1465_p6 = scmp.lt.s32.totalorder %s1456_s7, %s1456_s7 }
  0x25   : > { %p1459_p10 = pnand %p1457_p9, %p1445_p13  ;;  %p1466_p4 = por %p1465_p6, %p1464_p2 }
  0x27   : > { %p1460_p1 = pneg %p1459_p10 }
  0x29   : > { %p1467_p8 = pnand %p1466_p4, %p1460_p1 }
  0x2b   : > { %1470 = shalt.err (!%p1467_p8)
}
  0x2c   : > { %s1624_s8 = smov 192   ;;  %s1625_s9 = smov 12  }
  0x2d   : > { %1335 = dma.hbm_to_vmem [thread:$0]  (!%p1715_p11), %s2095_s2, 768, %s164_s24, [#allocation12], %s1624_s8, %s1624_s8, %s1625_s9  }
  0x2e   : > { %p43_p1 = scmp.ge.s32.totalorder %s41_s26, 2  ;;  %s50_s19 = sadd.s32 1, %s1609_s14 }
  0x2f   : > { %p57_p2 = scmp.ne.s32.totalorder %s1609_s14, %s1605_s13  ;;  %p58_p4 = scmp.eq.s32.totalorder %s1621_s17, 0 }
  0x30   : > { %s2115_s26 = smov (%p43_p1, %s41_s26), 0  ;;  %p2098_p8 = scmp.eq.s32.totalorder %s1687_s18, 1 }
  0x31   : > { %2096 = sst [smem:[#allocation19_spill]] %s2115_s26  ;;  %p1742_p6 = por %p58_p4, %p57_p2 }
  0x32   : > { %p1748_p10 = por %p2098_p8, %p57_p2  ;;  %s45_s27 = ssub.s32 %s1617_s16, %s2115_s26 }
  0x33   : > { %p1348_p11 = scmp.lt.s32.totalorder %s1621_s17, 2  ;;  %p48_p12 = scmp.eq.s32.totalorder %s45_s27, 0 }
  0x34   : > { %s2099_s25 = scalar_select %p1748_p10, 1, 0 }
  0x35   : > { %s177_s24 = sand.u32 1, %s1609_s14   ;;  %s1213_s30 = sshll.u32 %s1617_s16, 7 }
  0x36   : > { %s1756_s28 = sshll.u32 %s177_s24, 3  ;;  %s1765_s6 = scalar_lea.hbm %s2081_s0, %s1213_s30 }
  0x37   : > { %s1759_s29 = scalar_select %p48_p12, %s1609_s14, %s50_s19  }
  0x38   : > { %s181_s7 = scalar_lea.vmem [#allocation8], %s1756_s28  ;;  %p1772_p13 = pnand %p1348_p11, %p1742_p6 }
  0x39   : > { %s189_s8 = sshll.u32 %s181_s7, 4  ;;  %s1779_s19 = scalar_lea.hbm %s2082_s1, %s1213_s30  ;;  %s1768_s8 = int_to_ptr.vmem [resolvable:$true] %s189_s8 }
  0x3a   : > { %s196_s27 = sand.u32 1, %s1621_s17   ;;  %s178_s4 = scalar_lea.sflag [#allocation9], %s177_s24 }
  0x3b   : > { %s1471_s5 = scalar_lea.hbm %s1765_s6, 128  ;;  %p1473_p3 = pneg %p1772_p13 }
  0x3c   : > { %p1472_p0 = scmp.ne.s32.totalorder %s1765_s6, %s1471_s5  ;;  %s1476_s2 = scalar_lea.hbm %s2081_s0, 256 }
  0x3d   : > { %p1477_p9 = scmp.lt.u32.totalorder %s1765_s6, %s2081_s0  ;;  %p1478_p1 = scmp.lt.u32.totalorder %s1476_s2, %s1471_s5 }
  0x3e   : > { %p1474_p5 = pnand %p1473_p3, %p1472_p0  ;;  %p1480_p4 = scmp.lt.u32.totalorder %s1471_s5, %s1765_s6 }
  0x3f   : > { %p1479_p2 = por %p1478_p1, %p1477_p9 }
  0x40   : > { %p1475_p7 = pneg %p1474_p5 }
  0x41   : > { %p1481_p6 = por %p1480_p4, %p1479_p2 }
  0x43   : > { %p1482_p8 = pnand %p1481_p6, %p1475_p7 }
  0x45   : > { %1485 = shalt.err (!%p1482_p8)
}
  0x46   : > { %s1486_s24 = scalar_lea.vmem %s1768_s8, 128  ;;  %s1626_s30 = smov [#allocation8]  }
  0x47   : > { %p1487_p11 = scmp.ne.s32.totalorder %s1768_s8, %s1486_s24  ;;  %s1491_s11 = sshll.u32 %s1626_s30, 4  ;;  %s1492_s11 = int_to_ptr.vmem [resolvable:$false] %s1491_s11 }
  0x48   : > { %s1493_s26 = scalar_lea.vmem %s1492_s11, 256  ;;  %p1494_p5 = scmp.lt.s32.totalorder %s1768_s8, %s1492_s11 }
  0x49   : > { %p1489_p12 = pnand %p1487_p11, %p1473_p3  ;;  %p1495_p9 = scmp.lt.s32.totalorder %s1493_s26, %s1486_s24 }
  0x4b   : > { %p1490_p0 = pneg %p1489_p12  ;;  %p1496_p1 = por %p1495_p9, %p1494_p5 }
  0x4d   : > { %p1497_p2 = pnand %p1496_p1, %p1490_p0 }
  0x4f   : > { %1500 = shalt.err (!%p1497_p2)
}
  0x50   : > { %1339 = dma.hbm_to_vmem [thread:$0]  (!%p1772_p13), %s1765_s6, 128, %s1768_s8, %s178_s4  }
  0x51   : > { %s200_s2 = scalar_lea.vmem [#allocation11], %s1756_s28  ;;  %s197_s23 = scalar_lea.sflag [#allocation12], %s196_s27 }
  0x52   : > { %s208_s5 = sshll.u32 %s200_s2, 4  ;;  %s1501_s7 = scalar_lea.hbm %s1779_s19, 128  ;;  %s209_s5 = int_to_ptr.vmem [resolvable:$true] %s208_s5 }
  0x53   : > { %p1502_p7 = scmp.ne.s32.totalorder %s1779_s19, %s1501_s7  ;;  %s1506_s30 = scalar_lea.hbm %s2082_s1, 256 }
  0x54   : > { %p1507_p8 = scmp.lt.u32.totalorder %s1779_s19, %s2082_s1  ;;  %p1508_p11 = scmp.lt.u32.totalorder %s1506_s30, %s1501_s7 }
  0x55   : > { %p1504_p4 = pnand %p1502_p7, %p1473_p3  ;;  %p1510_p0 = scmp.lt.u32.totalorder %s1501_s7, %s1779_s19 }
  0x56   : > { %p1509_p12 = por %p1508_p11, %p1507_p8 }
  0x57   : > { %p1505_p6 = pneg %p1504_p4 }
  0x58   : > { %p1511_p5 = por %p1510_p0, %p1509_p12 }
  0x5a   : > { %p1512_p9 = pnand %p1511_p5, %p1505_p6 }
  0x5c   : > { %1515 = shalt.err (!%p1512_p9)
}
  0x5d   : > { %s1516_s28 = scalar_lea.vmem %s209_s5, 128  ;;  %s1627_s6 = smov [#allocation11]  }
  0x5e   : > { %p1517_p1 = scmp.ne.s32.totalorder %s209_s5, %s1516_s28  ;;  %s1521_s8 = sshll.u32 %s1627_s6, 4  ;;  %s1522_s8 = int_to_ptr.vmem [resolvable:$false] %s1521_s8 }
  0x5f   : > { %s1523_s27 = scalar_lea.vmem %s1522_s8, 256  ;;  %p1524_p4 = scmp.lt.s32.totalorder %s209_s5, %s1522_s8 }
  0x60   : > { %p1519_p2 = pnand %p1517_p1, %p1473_p3  ;;  %p1525_p10 = scmp.lt.s32.totalorder %s1523_s27, %s1516_s28 }
  0x62   : > { %p1520_p7 = pneg %p1519_p2  ;;  %p1526_p8 = por %p1525_p10, %p1524_p4 }
  0x64   : > { %p1527_p11 = pnand %p1526_p8, %p1520_p7 }
  0x66   : > { %1530 = shalt.err (!%p1527_p11)
}
  0x67   : > { %1342 = dma.hbm_to_vmem [thread:$0]  (!%p1772_p13), %s1779_s19, 128, %s209_s5, %s197_s23  }
  0x68   : > { %p2101_p6 = scmp.ne.s32.totalorder %s2093_s22, 0 }
  0x69   : > { %s1832_s4 = sand.u32 (!%p2101_p6), 1, %s1605_s13   ;;  %p2102_p10 = scmp.ne.s32.totalorder (!%p2101_p6), %s2091_s20, 0 }
  0x6a   : > { %217 = sbr.rel (%p2101_p6) target bundleno = 1409 (0x581), region = 32  ;;  %s1835_s2 = sshll.u32 (!%p2101_p6), %s1832_s4, 3 }
  0x6b   : > { %s220_s7 = scalar_lea.sflag (!%p2101_p6), [#allocation9], %s1832_s4  ;;  %s223_s10 = scalar_lea.vmem (!%p2101_p6), [#allocation8], %s1835_s2 }
  0x71   : > { %1584 = dma.done.wait (%p2102_p10), %s220_s7, 128  }
  0x72   : > { %1586 = vsyncadd (%p2102_p10), %s220_s7, 4294967168  ;;  %s228_s22 = sand.u32 1, %s1687_s18   ;;  %s232_s19 = scalar_lea.vmem [#allocation11], %s1835_s2 }
  0x73   : > { %s229_s9 = scalar_lea.sflag [#allocation12], %s228_s22 }
  0x74   : > { %1588 = dma.done.wait (%p2102_p10), %s229_s9, 128  }
  0x75   : > { %1590 = vsyncadd (%p2102_p10), %s229_s9, 4294967168  ;;  %p2103_p13 = scmp.eq.s32.totalorder %s1687_s18, 0 }
  0x77   : > { %1592 = dma.done.wait (%p2103_p13), [#allocation12], 768   ;;  %p2104_p3 = pmov %p2103_p13 }
  0x78   : > { %vm287_vm0 = vcmask 261120   ;;  %v1628_v0 = vmov 0.0   ;;  %vm1629_vm1 = vmmov 0   ;;  %v1630_v1 = vmov 0   ;;  %v1411_v2 = vld [vmem:[#allocation13] ss:$12 sps:$4 sm:$0xff]  }
  0x79   : > { %1594 = vsyncadd (%p2104_p3), [#allocation12], 4294966528  ;;  %1266 = vmatprep.subr.bf16.mxu0 %v1628_v0  ;;  %1270 = vmatprep.mubr.msk.bf16.mxu0 %vm1629_vm1, %v1628_v0  ;;  %361 = vst.msk [vmem:[#allocation7] sm:$0xff] %vm287_vm0, %v1628_v0  ;;  %v1412_v3 = vld [vmem:[#allocation13 + $0x8] ss:$12 sps:$4 sm:$0xff]   ;;  %vm332_vm2 = vcmask 257024   ;;  %v674_v43 = vlaneseq }
  0x7a   : > { %362 = vst.msk [vmem:[#allocation7 + $0x8] sm:$0xff] %vm287_vm0, %v1628_v0  ;;  %363 = vst.msk [vmem:[#allocation7 + $0x10] sm:$0xff] %vm287_vm0, %v1628_v0  ;;  %431 = vmatprep.mubr.bf16.mxu1 %v1630_v1  ;;  %1409 = vset.pattern.permute.xlu1 %v1630_v1  ;;  %v1414_v4 = vld [vmem:[#allocation13 + $0x4] ss:$12 sps:$4 sm:$0xff]   ;;  %v1416_v6 = vld [vmem:[#allocation13 + $0x20] ss:$12 sps:$4 sm:$0xff]  }
  0x7b   : > { %364 = vst.msk [vmem:[#allocation7 + $0x18] sm:$0xff] %vm287_vm0, %v1628_v0  ;;  %1410 = vset.pattern.permute.xlu0 %v1630_v1  ;;  %1267 = vmatpush3.bf16.msra.mxu0 %v1411_v2  ;;  %v1415_v5 = vld [vmem:[#allocation13 + $0x18] ss:$12 sps:$4 sm:$0xff]   ;;  %v1418_v7 = vld [vmem:[#allocation13 + $0x1c] ss:$12 sps:$4 sm:$0xff]   ;;  %s1631_s18 = smov 96  }
  0x7c   : > { %399 = vmatprep.subr.bf16.mxu1 %v1412_v3  ;;  %1268 = vmatprep.subr.bf16.mxu0 %v1628_v0  ;;  %v269_v8 = vld [vmem:[%s223_s10] sm:$0xff]  ;;  %v369_v10 = vld [vmem:[%s232_s19] sm:$0xff]  ;;  %s1632_s20 = smov 32   ;;  %s1633_s5 = smov 64   ;;  %vm795_vm3 = vcmask 1043456   ;;  %v675_v44 = vshrl.u32 %v674_v43, 7 }
  0x7d   : > { %400 = vmatpush1.bf16.msra.mxu1 %v1414_v4  ;;  %v270_v9 = vpack.c.bf16 %v269_v8, %v269_v8  ;;  %v370_v11 = vpack.c.bf16 %v369_v10, %v369_v10  ;;  %v680_v45 = vand.u32 127, %v674_v43  ;;  %vm352_vm5 = vcmask 7168   ;;  %s263_s23 = scalar_lea.vmem [#allocation14], %s1835_s2  ;;  %s1241_s24 = sshll.u32 %s1613_s15, 7 }
  0x7e   : > { %401 = vmatprep.subr.bf16.mxu1 %v1416_v6  ;;  %vm694_vm6 = vcmask 64512   ;;  %v1634_v46 = vmov -1e+30   ;;  %357 = vst.msk [vmem:[#allocation6] sm:$0xff] %vm352_vm5, %v1628_v0  ;;  %358 = vst.msk [vmem:[#allocation6 + $0x8] sm:$0xff] %vm352_vm5, %v1628_v0  ;;  %vm1062_vm7 = vcmask 523520   ;;  %s2032_s28 = scalar_lea.hbm %s2084_s3, %s1241_s24 }
  0x7f   : > { %1269 = vmatpush3.bf16.msra.mxu0 %v1415_v5  ;;  %vm683_vm4 = vcmp.gt.s32.totalorder %v680_v45, %v675_v44  ;;  %353 = vst.msk [vmem:[#allocation5] sm:$0xff] %vm352_vm5, %v1634_v46  ;;  %354 = vst.msk [vmem:[#allocation5 + $0x8] sm:$0xff] %vm352_vm5, %v1634_v46  ;;  %vm1068_vm8 = vcmask 785920   ;;  %s1091_s30 = sshll.u32 %s263_s23, 4  ;;  %vm1074_vm9 = vcmask 1048320   ;;  %s1077_s6 = scalar_lea.sflag [#allocation10], %s1832_s4  ;;  %s2034_s30 = int_to_ptr.vmem [resolvable:$true] %s1091_s30 }
  0x80   : > { %1274 = vmatprep.subr.bf16.mxu0 %v1628_v0  ;;  %355 = vst.msk [vmem:[#allocation5 + $0x10] sm:$0xff] %vm352_vm5, %v1634_v46  ;;  %356 = vst.msk [vmem:[#allocation5 + $0x18] sm:$0xff] %vm352_vm5, %v1634_v46  ;;  %s1531_s8 = scalar_lea.vmem %s2034_s30, 128  ;;  %p2105_p0 = scmp.ne.s32.totalorder %s2099_s25, 0 }
  0x81   : > { %402 = vmatpush1.bf16.msra.mxu1 %v1418_v7  ;;  %359 = vst.msk [vmem:[#allocation6 + $0x10] sm:$0xff] %vm352_vm5, %v1628_v0  ;;  %360 = vst.msk [vmem:[#allocation6 + $0x18] sm:$0xff] %vm352_vm5, %v1628_v0  ;;  %p1532_p12 = scmp.ne.s32.totalorder %s2034_s30, %s1531_s8  ;;  %s1635_s15 = smov [#allocation14]  }
  0x82   : > { %1271 = vmatmul.mubr.msk.bf16.vlgmr.msra.gmra.mrb[0].mxu0 %vm287_vm0, %v270_v9  ;;  %1280 = vmatprep.subr.bf16.mxu1 %v1628_v0  ;;  %s1535_s27 = sshll.u32 %s1635_s15, 4  ;;  %s1536_s27 = int_to_ptr.vmem [resolvable:$false] %s1535_s27 }
  0x83   : > { %1276 = vmatprep.mubr.msk.bf16.mxu0 %vm1629_vm1, %v1628_v0  ;;  %p1533_p5 = pnand %p1532_p12, %p2105_p0  ;;  %s1537_s2 = scalar_lea.vmem %s1536_s27, 256 }
  0x84   : > { %1229 = vmatmul.mubr.msk.bf16.vlgmr.msra.gmra.mrb[0].mxu1 %vm287_vm0, %v370_v11  ;;  %p1538_p1 = scmp.lt.s32.totalorder %s2034_s30, %s1536_s27  ;;  %p1539_p2 = scmp.lt.s32.totalorder %s1537_s2, %s1531_s8 }
  0x85   : > { %1282 = vmatprep.mubr.msk.bf16.mxu1 %vm1629_vm1, %v1628_v0  ;;  %p1534_p9 = pneg %p1533_p5 }
  0x86   : > { %v1935_v8 = vld [vmem:[#allocation5] sm:$0xff]  ;;  %p1540_p7 = por %p1539_p2, %p1538_p1 }
  0x88   : > { %p1541_p4 = pnand %p1540_p7, %p1534_p9 }
 0x155   : > { %v325_v12 = vpop.f32.mrb[0].mxu0 }
 0x156   : > { %v331_v13 = vpack.c.bf16 %v325_v12, %v325_v12  ;;  %v1272_v14 = vpop.f32.mrb[1].mxu0  ;;  %v1945_v12 = vld [vmem:[#allocation5 + $0x8] sm:$0xff] }
 0x157   : > { %v433_v15 = vpop.f32.mrb[0].mxu1  ;;  %v328_v16 = vpop.f32.mrb[2].mxu0 }
 0x158   : > { %333 = vst.msk [vmem:[#allocation2] sm:$0xf] %vm332_vm2, %v331_v13  ;;  %v440_v17 = vpack.c.bf16 %v433_v15, %v433_v15  ;;  %v435_v18 = vpop.f32.mrb[1].mxu1  ;;  %337 = vrot.lane.b32.xlu1 %v331_v13, %s1631_s18  ;;  %v1273_v19 = vpop.f32.mrb[3].mxu0  ;;  %v1950_v15 = vld [vmem:[#allocation5 + $0x10] sm:$0xff] }
 0x159   : > { %v1877_v20 = vpack.c.bf16 %v435_v18, %v435_v18  ;;  %v437_v21 = vpop.f32.mrb[2].mxu1  ;;  %v1960_v19 = vld [vmem:[#allocation5 + $0x18] sm:$0xff] }
 0x15a   : > { %443 = vst.msk [vmem:[#allocation3] sm:$0xf] %vm332_vm2, %v440_v17  ;;  %448 = vrot.lane.b32.xlu0 %v440_v17, %s1631_s18  ;;  %v438_v22 = vpop.f32.mrb[3].mxu1 }
 0x15b   : > { %444 = vst.msk [vmem:[#allocation4] sm:$0xf] %vm332_vm2, %v1877_v20 }
 0x15c   : > { %471 = vrot.lane.b32.xlu1 %v440_v17, %s1632_s20 }
 0x15e   : > { %461 = vrot.lane.b32.xlu0 %v440_v17, %s1633_s5 }
 0x15f   : > { %v481_v25 = vld [vmem:[#allocation2] sm:$0xf] }
 0x160   : > { %347 = vrot.lane.b32.xlu1 %v331_v13, %s1632_s20 }
 0x161   : > { %v485_v23 = vld [vmem:[#allocation3] sm:$0xf] }
 0x162   : > { %342 = vrot.lane.b32.xlu0 %v331_v13, %s1633_s5  ;;  %v493_v24 = vsel %vm287_vm0, %v485_v23, 0  ;;  %v788_v39 = vld [vmem:[#allocation4] sm:$0xf] }
 0x163   : > { %1275 = vmatpush3.bf16.xpose.msra.mxu0 %v493_v24  ;;  %v797_v41 = vsel %vm795_vm3, %v788_v39, 0 }
 0x164   : > { %1286 = vmatprep.subr.bf16.mxu0 %v1628_v0 }
 0x16a   : > { %1277 = vmatmul.mubr.msk.bf16.vlgmr.msra.gmra.mrb[4].mxu0 %vm287_vm0, %v481_v25 }
 0x16b   : > { %1288 = vmatprep.mubr.msk.bf16.mxu0 %vm1629_vm1, %v1628_v0 }
 0x1ca   : > { %v338_v26 = vpop.permute.xlu1 %337 }
 0x1cb   : > { %341 = vst.msk [vmem:[#allocation2 + $0x4] sm:$0xf] %vm332_vm2, %v338_v26 }
 0x1cc   : > { %v449_v27 = vpop.permute.xlu0 %448 }
 0x1cd   : > { %452 = vst.msk [vmem:[#allocation3 + $0x4] sm:$0xf] %vm332_vm2, %v449_v27 }
 0x1ce   : > { %v472_v28 = vpop.permute.xlu1 %471 }
 0x1cf   : > { %475 = vst.msk [vmem:[#allocation3 + $0xc] sm:$0xf] %vm332_vm2, %v472_v28 }
 0x1d0   : > { %v462_v29 = vpop.permute.xlu0 %461 }
 0x1d1   : > { %465 = vst.msk [vmem:[#allocation3 + $0x8] sm:$0xf] %vm332_vm2, %v462_v29 }
 0x1d2   : > { %v348_v30 = vpop.permute.xlu1 %347  ;;  %v482_v37 = vld [vmem:[#allocation2 + $0x4] sm:$0xf] }
 0x1d3   : > { %351 = vst.msk [vmem:[#allocation2 + $0xc] sm:$0xf] %vm332_vm2, %v348_v30 }
 0x1d4   : > { %v343_v31 = vpop.permute.xlu0 %342  ;;  %v486_v32 = vld [vmem:[#allocation3 + $0x4] sm:$0xf] }
 0x1d5   : > { %346 = vst.msk [vmem:[#allocation2 + $0x8] sm:$0xf] %vm332_vm2, %v343_v31  ;;  %v539_v33 = vsel %vm287_vm0, %v486_v32, 0 }
 0x1d6   : > { %1281 = vmatpush3.bf16.xpose.msra.mxu1 %v539_v33  ;;  %v488_v36 = vld [vmem:[#allocation3 + $0xc] sm:$0xf] }
 0x1d7   : > { %1292 = vmatprep.subr.bf16.mxu1 %v1628_v0  ;;  %v631_v38 = vsel %vm287_vm0, %v488_v36, 0 }
 0x1d8   : > { %v487_v34 = vld [vmem:[#allocation3 + $0x8] sm:$0xf] }
 0x1d9   : > { %v585_v35 = vsel %vm287_vm0, %v487_v34, 0 }
 0x1da   : > { %1287 = vmatpush3.bf16.xpose.msra.mxu0 %v585_v35  ;;  %v484_v42 = vld [vmem:[#allocation2 + $0xc] sm:$0xf] }
 0x1db   : > { %1298 = vmatprep.subr.bf16.mxu0 %v1628_v0 }
 0x1dc   : > { %v483_v40 = vld [vmem:[#allocation2 + $0x8] sm:$0xf] }
 0x1dd   : > { %1283 = vmatmul.mubr.msk.bf16.vlgmr.msra.gmra.mrb[4].mxu1 %vm287_vm0, %v482_v37 }
 0x1de   : > { %1293 = vmatpush3.bf16.xpose.msra.mxu1 %v631_v38  ;;  %1294 = vmatprep.mubr.msk.bf16.mxu1 %vm1629_vm1, %v1628_v0 }
 0x1df   : > { %1304 = vmatprep.subr.bf16.mxu1 %v1628_v0 }
 0x1e1   : > { %1289 = vmatmul.mubr.msk.bf16.vlgmr.msra.gmra.mrb[8].mxu0 %vm287_vm0, %v483_v40 }
 0x1e2   : > { %1299 = vmatpush3.bf16.msra.mxu0 %v797_v41  ;;  %1300 = vmatprep.mubr.msk.bf16.mxu0 %vm1629_vm1, %v1628_v0 }
 0x1e3   : > { %1310 = vmatprep.subr.bf16.mxu0 %v1628_v0 }
 0x1e5   : > { %1295 = vmatmul.mubr.msk.bf16.vlgmr.msra.gmra.mrb[8].mxu1 %vm287_vm0, %v484_v42 }
 0x1e6   : > { %1306 = vmatprep.mubr.msk.bf16.mxu1 %vm1629_vm1, %v1628_v0 }
 0x23d   : > { %v529_v47 = vpop.f32.mrb[4].mxu0 }
 0x23e   : > { %v686_v48 = vsel %vm683_vm4, -1e+30, %v529_v47  ;;  %v1278_v49 = vpop.f32.mrb[5].mxu0 }
 0x23f   : > { %v532_v50 = vpop.f32.mrb[6].mxu0  ;;  %v695_v51 = vsel %vm694_vm6, %v686_v48, -inf }
 0x240   : > { %696 = vmax.xlane.f32.xlu0 %v695_v51  ;;  %v1279_v52 = vpop.f32.mrb[7].mxu0 }
 0x2b0   : > { %v575_v53 = vpop.f32.mrb[4].mxu1 }
 0x2b1   : > { %v687_v54 = vsel %vm683_vm4, -1e+30, %v575_v53  ;;  %v1284_v55 = vpop.f32.mrb[5].mxu1 }
 0x2b2   : > { %v578_v56 = vpop.f32.mrb[6].mxu1  ;;  %v698_v57 = vsel %vm694_vm6, %v687_v54, -inf }
 0x2b3   : > { %699 = vmax.xlane.f32.xlu1 %v698_v57  ;;  %v1285_v58 = vpop.f32.mrb[7].mxu1 }
 0x2b4   : > { %v621_v59 = vpop.f32.mrb[8].mxu0 }
 0x2b5   : > { %v688_v60 = vsel %vm683_vm4, -1e+30, %v621_v59  ;;  %v1290_v61 = vpop.f32.mrb[9].mxu0 }
 0x2b6   : > { %v624_v62 = vpop.f32.mrb[10].mxu0  ;;  %v701_v63 = vsel %vm694_vm6, %v688_v60, -inf }
 0x2b7   : > { %702 = vmax.xlane.f32.xlu0 %v701_v63  ;;  %v1291_v1 = vpop.f32.mrb[11].mxu0 }
 0x2b8   : > { %v667_v2 = vpop.f32.mrb[8].mxu1 }
 0x2b9   : > { %v689_v3 = vsel %vm683_vm4, -1e+30, %v667_v2  ;;  %v1296_v4 = vpop.f32.mrb[9].mxu1 }
 0x2ba   : > { %v670_v5 = vpop.f32.mrb[10].mxu1  ;;  %v704_v6 = vsel %vm694_vm6, %v689_v3, -inf  ;;  %v756_v4 = vld [vmem:[#allocation6 + $0x8] sm:$0xff] }
 0x2bb   : > { %v1297_v7 = vpop.f32.mrb[11].mxu1  ;;  %705 = vmax.xlane.f32.xlu0 %v704_v6 }
 0x2bc   : > { %v757_v7 = vld [vmem:[#allocation6 + $0x10] sm:$0xff] }
 0x2cd   : > { %v697_v9 = vpop.xlane.xlu0 %696 }
 0x2ce   : > { %v1938_v10 = vmax.f32 %v1935_v8, %v697_v9 }
 0x2d0   : > { %v711_v11 = vsub.f32 %v1935_v8, %v1938_v10  ;;  %1013 = vst.msk [vmem:[#allocation5] sm:$0xff] %vm352_vm5, %v1938_v10  ;;  %725 = vperm.xlu1 %1409, %v1938_v10  }
 0x340   : > { %v700_v13 = vpop.xlane.xlu1 %699 }
 0x341   : > { %v1948_v14 = vmax.f32 %v1945_v12, %v700_v13 }
 0x343   : > { %v712_v16 = vsub.f32 %v1945_v12, %v1948_v14  ;;  %1014 = vst.msk [vmem:[#allocation5 + $0x8] sm:$0xff] %vm352_vm5, %v1948_v14  ;;  %730 = vperm.xlu0 %1410, %v1948_v14   ;;  %v758_v14 = vld [vmem:[#allocation6 + $0x18] sm:$0xff] }
 0x344   : > { %v703_v17 = vpop.xlane.xlu0 %702 }
 0x345   : > { %v1958_v18 = vmax.f32 %v1950_v15, %v703_v17  ;;  %v717_v53 = vmul.f32 1.442695, %v712_v16 }
 0x347   : > { %v713_v21 = vsub.f32 %v1950_v15, %v1958_v18  ;;  %1015 = vst.msk [vmem:[#allocation5 + $0x10] sm:$0xff] %vm352_vm5, %v1958_v18  ;;  %735 = vperm.xlu1 %1409, %v1958_v18  }
 0x348   : > { %v706_v22 = vpop.xlane.xlu0 %705 }
 0x349   : > { %v1968_v23 = vmax.f32 %v1960_v19, %v706_v22  ;;  %v719_v57 = vmul.f32 1.442695, %v713_v21 }
 0x34b   : > { %v714_v24 = vsub.f32 %v1960_v19, %v1968_v23  ;;  %1016 = vst.msk [vmem:[#allocation5 + $0x18] sm:$0xff] %vm352_vm5, %v1968_v23  ;;  %740 = vperm.xlu1 %1409, %v1968_v23   ;;  %v755_v19 = vld [vmem:[#allocation6] sm:$0xff] }
 0x34f   : > { %v726_v25 = vpop.permute.xlu1 %725  ;;  %456 = vrot.lane.b32.xlu1 %v1877_v20, %s1631_s18 }
 0x350   : > { %v743_v26 = vsub.f32 %v686_v48, %v726_v25 }
 0x352   : > { %v747_v27 = vmul.f32 1.442695, %v743_v26 }
 0x353   : > { %466 = vrot.lane.b32.xlu1 %v1877_v20, %s1633_s5 }
 0x354   : > { %1419 = vpow2.f32 %v747_v27 }
 0x357   : > { %476 = vrot.lane.b32.xlu1 %v1877_v20, %s1632_s20 }
 0x35e   : > { %v1420_v28 = vpop.eup %1419 }
 0x35f   : > { %v784_v29 = vpack.c.bf16 %v1420_v28, %v1420_v28 }
 0x361   : > { %1301 = vmatmul.mubr.msk.bf16.vlgmr.msra.gmra.mrb[12].mxu0 %vm694_vm6, %v784_v29 }
 0x362   : > { %1312 = vmatprep.mubr.msk.bf16.mxu0 %vm1629_vm1, %v1628_v0 }
 0x3c2   : > { %v731_v30 = vpop.permute.xlu0 %730 }
 0x3c3   : > { %v744_v31 = vsub.f32 %v687_v54, %v731_v30  ;;  %v763_v54 = vsel %vm694_vm6, %v1420_v28, 0.0  ;;  %v978_v30 = vld [vmem:[#allocation7 + $0x8] sm:$0xff] }
 0x3c5   : > { %v749_v32 = vmul.f32 1.442695, %v744_v31 }
 0x3c6   : > { %v736_v33 = vpop.permute.xlu1 %735 }
 0x3c7   : > { %1421 = vpow2.f32 %v749_v32  ;;  %v745_v34 = vsub.f32 %v688_v60, %v736_v33 }
 0x3c9   : > { %v751_v35 = vmul.f32 1.442695, %v745_v34  ;;  %v979_v34 = vld [vmem:[#allocation7 + $0x10] sm:$0xff] }
 0x3ca   : > { %v741_v36 = vpop.permute.xlu1 %740 }
 0x3cb   : > { %1423 = vpow2.f32 %v751_v35  ;;  %v746_v37 = vsub.f32 %v689_v3, %v741_v36  ;;  %v715_v3 = vmul.f32 1.442695, %v711_v11 }
 0x3cd   : > { %v753_v38 = vmul.f32 1.442695, %v746_v37 }
 0x3ce   : > { %v457_v39 = vpop.permute.xlu1 %456 }
 0x3cf   : > { %1425 = vpow2.f32 %v753_v38  ;;  %460 = vst.msk [vmem:[#allocation4 + $0x4] sm:$0xf] %vm332_vm2, %v457_v39 }
 0x3d0   : > { %1427 = vpow2.f32 %v717_v53 }
 0x3d1   : > { %v1422_v20 = vpop.eup %1421  ;;  %1429 = vpow2.f32 %v719_v57 }
 0x3d2   : > { %v467_v40 = vpop.permute.xlu1 %466  ;;  %v766_v41 = vsel %vm694_vm6, %v1422_v20, 0.0  ;;  %v785_v48 = vpack.c.bf16 %v1422_v20, %v1422_v20 }
 0x3d3   : > { %470 = vst.msk [vmem:[#allocation4 + $0x8] sm:$0xf] %vm332_vm2, %v467_v40  ;;  %767 = vadd.xlane.f32.xlu1 %v766_v41  ;;  %v980_v40 = vld [vmem:[#allocation7 + $0x18] sm:$0xff] }
 0x3d5   : > { %v1424_v42 = vpop.eup %1423 }
 0x3d6   : > { %v477_v43 = vpop.permute.xlu1 %476  ;;  %v769_v44 = vsel %vm694_vm6, %v1424_v42, 0.0  ;;  %v789_v45 = vld [vmem:[#allocation4 + $0x4] sm:$0xf]  ;;  %v786_v52 = vpack.c.bf16 %v1424_v42, %v1424_v42 }
 0x3d7   : > { %480 = vst.msk [vmem:[#allocation4 + $0xc] sm:$0xf] %vm332_vm2, %v477_v43  ;;  %770 = vadd.xlane.f32.xlu0 %v769_v44  ;;  %v843_v46 = vsel %vm795_vm3, %v789_v45, 0 }
 0x3d8   : > { %1305 = vmatpush3.bf16.msra.mxu1 %v843_v46 }
 0x3d9   : > { %v1426_v47 = vpop.eup %1425  ;;  %1316 = vmatprep.subr.bf16.mxu1 %v1628_v0 }
 0x3da   : > { %v772_v49 = vsel %vm694_vm6, %v1426_v47, 0.0  ;;  %v790_v50 = vld [vmem:[#allocation4 + $0x8] sm:$0xf]  ;;  %v787_v58 = vpack.c.bf16 %v1426_v47, %v1426_v47  ;;  %v1428_v59 = vpop.eup %1427 }
 0x3db   : > { %1307 = vmatmul.mubr.msk.bf16.vlgmr.msra.gmra.mrb[12].mxu1 %vm694_vm6, %v785_v48  ;;  %773 = vadd.xlane.f32.xlu1 %v772_v49  ;;  %v889_v51 = vsel %vm795_vm3, %v790_v50, 0  ;;  %v1430_v60 = vpop.eup %1429  ;;  %v760_v5 = vmul.f32 %v1428_v59, %v756_v4 }
 0x3dc   : > { %1311 = vmatpush3.bf16.msra.mxu0 %v889_v51  ;;  %1318 = vmatprep.mubr.msk.bf16.mxu1 %vm1629_vm1, %v1628_v0  ;;  %v721_v0 = vmul.f32 1.442695, %v714_v24  ;;  %v761_v12 = vmul.f32 %v1430_v60, %v757_v7 }
 0x3de   : > { %v791_v55 = vld [vmem:[#allocation4 + $0xc] sm:$0xf]  ;;  %1431 = vpow2.f32 %v721_v0  ;;  %v977_v0 = vld [vmem:[#allocation7] sm:$0xff] }
 0x3df   : > { %1313 = vmatmul.mubr.msk.bf16.vlgmr.msra.gmra.mrb[16].mxu0 %vm694_vm6, %v786_v52  ;;  %764 = vadd.xlane.f32.xlu1 %v763_v54  ;;  %v935_v56 = vsel %vm795_vm3, %v791_v55, 0  ;;  %1433 = vpow2.f32 %v715_v3 }
 0x3e0   : > { %1317 = vmatpush3.bf16.msra.mxu1 %v935_v56 }
 0x3e3   : > { %1319 = vmatmul.mubr.msk.bf16.vlgmr.msra.gmra.mrb[16].mxu1 %vm694_vm6, %v787_v58 }
 0x3e8   : > { %v1432_v61 = vpop.eup %1431 }
 0x3e9   : > { %v762_v16 = vmul.f32 %v1432_v61, %v758_v14  ;;  %v1434_v17 = vpop.eup %1433 }
 0x3ea   : > { %v759_v11 = vmul.f32 %v1434_v17, %v755_v19 }
 0x3ed   : > { %988 = vperm.xlu0 %1410, %v1428_v59  }
 0x3f0   : > { %993 = vperm.xlu1 %1409, %v1430_v60  }
 0x3f4   : > { %998 = vperm.xlu1 %1409, %v1432_v61  }
 0x434   : > { %v2009_v62 = vpop.f32.mrb[12].mxu0 }
 0x435   : > { %v1302_v63 = vpop.f32.mrb[13].mxu0 }
 0x436   : > { %v836_v1 = vpop.f32.mrb[14].mxu0 }
 0x437   : > { %v1303_v2 = vpop.f32.mrb[15].mxu0 }
 0x460   : > { %v768_v6 = vpop.xlane.xlu1 %767 }
 0x461   : > { %v776_v9 = vadd.f32 %v768_v6, %v760_v5 }
 0x463   : > { %781 = vst.msk [vmem:[#allocation6 + $0x8] sm:$0xff] %vm352_vm5, %v776_v9 }
 0x464   : > { %v771_v13 = vpop.xlane.xlu0 %770 }
 0x465   : > { %v777_v15 = vadd.f32 %v771_v13, %v761_v12 }
 0x467   : > { %782 = vst.msk [vmem:[#allocation6 + $0x10] sm:$0xff] %vm352_vm5, %v777_v15 }
 0x468   : > { %v774_v18 = vpop.xlane.xlu1 %773 }
 0x469   : > { %v778_v8 = vadd.f32 %v774_v18, %v762_v16 }
 0x46a   : > { %v1025_v10 = vld [vmem:[#allocation6 + $0x8] sm:$0xff] }
 0x46b   : > { %783 = vst.msk [vmem:[#allocation6 + $0x18] sm:$0xff] %vm352_vm5, %v778_v8  ;;  %1435 = vrcp.f32 %v1025_v10 }
 0x46c   : > { %v765_v21 = vpop.xlane.xlu1 %764  ;;  %v989_v31 = vpop.permute.xlu0 %988 }
 0x46d   : > { %v775_v22 = vadd.f32 %v765_v21, %v759_v11  ;;  %v1002_v33 = vmul.f32 %v989_v31, %v978_v30 }
 0x46e   : > { %v1026_v23 = vld [vmem:[#allocation6 + $0x10] sm:$0xff] }
 0x46f   : > { %780 = vst.msk [vmem:[#allocation6] sm:$0xff] %vm352_vm5, %v775_v22  ;;  %1437 = vrcp.f32 %v1026_v23 }
 0x470   : > { %v994_v32 = vpop.permute.xlu1 %993 }
 0x471   : > { %v1003_v39 = vmul.f32 %v994_v32, %v979_v34 }
 0x472   : > { %v1027_v24 = vld [vmem:[#allocation6 + $0x18] sm:$0xff] }
 0x473   : > { %1439 = vrcp.f32 %v1027_v24 }
 0x474   : > { %v999_v41 = vpop.permute.xlu1 %998 }
 0x475   : > { %v1436_v25 = vpop.eup %1435  ;;  %v1004_v46 = vmul.f32 %v999_v41, %v980_v40 }
 0x476   : > { %1039 = vperm.xlu0 %1410, %v1436_v25   ;;  %v1024_v26 = vld [vmem:[#allocation6] sm:$0xff] }
 0x477   : > { %1441 = vrcp.f32 %v1024_v26 }
 0x479   : > { %v1438_v27 = vpop.eup %1437 }
 0x47a   : > { %1044 = vperm.xlu1 %1409, %v1438_v27  }
 0x47d   : > { %v1440_v28 = vpop.eup %1439 }
 0x47e   : > { %1049 = vperm.xlu0 %1410, %v1440_v28   ;;  %983 = vperm.xlu1 %1409, %v1434_v17  }
 0x481   : > { %v1442_v29 = vpop.eup %1441 }
 0x482   : > { %1034 = vperm.xlu0 %1410, %v1442_v29  }
 0x4ae   : > { %v879_v35 = vpop.f32.mrb[12].mxu1 }
 0x4af   : > { %v1006_v36 = vadd.f32 %v1002_v33, %v879_v35  ;;  %v1308_v37 = vpop.f32.mrb[13].mxu1 }
 0x4b0   : > { %v882_v38 = vpop.f32.mrb[14].mxu1 }
 0x4b1   : > { %1010 = vst.msk [vmem:[#allocation7 + $0x8] sm:$0xff] %vm287_vm0, %v1006_v36  ;;  %v1309_v20 = vpop.f32.mrb[15].mxu1 }
 0x4b2   : > { %v925_v42 = vpop.f32.mrb[16].mxu0 }
 0x4b3   : > { %v1007_v43 = vadd.f32 %v1003_v39, %v925_v42  ;;  %v1314_v44 = vpop.f32.mrb[17].mxu0 }
 0x4b4   : > { %v928_v45 = vpop.f32.mrb[18].mxu0 }
 0x4b5   : > { %1011 = vst.msk [vmem:[#allocation7 + $0x10] sm:$0xff] %vm287_vm0, %v1007_v43  ;;  %v1315_v47 = vpop.f32.mrb[19].mxu0 }
 0x4b6   : > { %v971_v48 = vpop.f32.mrb[16].mxu1 }
 0x4b7   : > { %v1008_v49 = vadd.f32 %v1004_v46, %v971_v48  ;;  %v1320_v50 = vpop.f32.mrb[17].mxu1 }
 0x4b8   : > { %v974_v51 = vpop.f32.mrb[18].mxu1  ;;  %v1021_v53 = vld [vmem:[#allocation7 + $0x8] sm:$0xff] }
 0x4b9   : > { %1012 = vst.msk [vmem:[#allocation7 + $0x18] sm:$0xff] %vm287_vm0, %v1008_v49  ;;  %v1321_v52 = vpop.f32.mrb[19].mxu1 }
 0x4bc   : > { %v1022_v57 = vld [vmem:[#allocation7 + $0x10] sm:$0xff] }
 0x4c0   : > { %v1023_v60 = vld [vmem:[#allocation7 + $0x18] sm:$0xff] }
 0x4f5   : > { %v1040_v54 = vpop.permute.xlu0 %1039 }
 0x4f6   : > { %v1053_v55 = vmul.f32 %v1040_v54, %v1021_v53 }
 0x4f8   : > { %1059 = vrot.lane.b32.xlu1 %v1053_v55, %s1632_s20 }
 0x4f9   : > { %v1045_v56 = vpop.permute.xlu1 %1044 }
 0x4fa   : > { %v1054_v58 = vmul.f32 %v1045_v56, %v1022_v57 }
 0x4fc   : > { %1065 = vrot.lane.b32.xlu0 %v1054_v58, %s1633_s5 }
 0x4fd   : > { %v984_v59 = vpop.permute.xlu1 %983  ;;  %v1050_v61 = vpop.permute.xlu0 %1049 }
 0x4fe   : > { %v1001_v63 = vmul.f32 %v984_v59, %v977_v0  ;;  %v1055_v1 = vmul.f32 %v1050_v61, %v1023_v60 }
 0x500   : > { %v1005_v2 = vadd.f32 %v1001_v63, %v2009_v62  ;;  %1071 = vrot.lane.b32.xlu1 %v1055_v1, %s1631_s18 }
 0x501   : > { %v1035_v3 = vpop.permute.xlu0 %1034 }
 0x502   : > { %1009 = vst.msk [vmem:[#allocation7] sm:$0xff] %vm287_vm0, %v1005_v2 }
 0x509   : > { %v1020_v4 = vld [vmem:[#allocation7] sm:$0xff] }
 0x50a   : > { %v1052_v5 = vmul.f32 %v1035_v3, %v1020_v4 }
 0x50c   : > { %1057 = vst.msk [vmem:[%s263_s23] sm:$0xff] %vm287_vm0, %v1052_v5 }
 0x56a   : > { %v1060_v6 = vpop.permute.xlu1 %1059 }
 0x56b   : > { %1063 = vst.msk [vmem:[%s263_s23] sm:$0xff] %vm1062_vm7, %v1060_v6 }
 0x56e   : > { %v1066_v7 = vpop.permute.xlu0 %1065 }
 0x56f   : > { %1069 = vst.msk [vmem:[%s263_s23] sm:$0xff] %vm1068_vm8, %v1066_v7 }
 0x572   : > { %v1072_v62 = vpop.permute.xlu1 %1071 }
 0x573   : > { %1075 = vst.msk [vmem:[%s263_s23] sm:$0xff] %vm1074_vm9, %v1072_v62 }
 0x574   : > { %1544 = shalt.err (!%p1541_p4)
}
 0x575   : > { %s1545_s4 = scalar_lea.hbm %s2032_s28, 128  ;;  %s1549_s22 = scalar_lea.hbm %s2084_s3, 256 }
 0x576   : > { %p1546_p8 = scmp.ne.s32.totalorder %s2032_s28, %s1545_s4  ;;  %p1550_p10 = scmp.lt.u32.totalorder %s2032_s28, %s2084_s3 }
 0x577   : > { %p1551_p13 = scmp.lt.u32.totalorder %s1549_s22, %s1545_s4  ;;  %p1553_p12 = scmp.lt.u32.totalorder %s1545_s4, %s2032_s28 }
 0x578   : > { %p1547_p11 = pnand %p1546_p8, %p2105_p0 }
 0x579   : > { %p1552_p3 = por %p1551_p13, %p1550_p10 }
 0x57a   : > { %p1548_p6 = pneg %p1547_p11 }
 0x57b   : > { %p1554_p5 = por %p1553_p12, %p1552_p3 }
 0x57d   : > { %p1555_p9 = pnand %p1554_p5, %p1548_p6 }
 0x57f   : > { %1558 = shalt.err (!%p1555_p9)
}
 0x580   : > { %1330 = dma.vmem_to_hbm [thread:$0]  (%p2105_p0), %s2034_s30, 128, %s2032_s28, %s1077_s6  }
 0x581 PF: > { %s1103_s18 = sand.u32 1, %s1601_s12   ;;  %p2106_p1 = scmp.ne.s32.totalorder %s2092_s21, 0 }
 0x582   : > { %p2107_p2 = scmp.ge.s32.totalorder %s1621_s17, 2  ;;  %s1104_s20 = scalar_lea.sflag [#allocation10], %s1103_s18 }
 0x584   : > { %p1344_p7 = pnand %p2107_p2, %p2106_p1 }
 0x586   : > { %1596 = dma.done.wait (!%p1344_p7), %s1104_s20, 128  }
 0x587   : > { %1598 = vsyncadd (!%p1344_p7), %s1104_s20, 4294967168  ;;  %s22_s17 = sadd.s32 1, %s1621_s17   ;;  %s2108_s25 = sld [smem:[#allocation19_spill]] }
 0x588   : > { %p19_p4 = scmp.ge.s32.totalorder %s22_s17, 4   ;;  %s2109_s12 = smov %s1605_s13 }
 0x589   : > { %s2110_s13 = smov %s1609_s14  ;;  %s2111_s14 = smov %s1759_s29 }
 0x58a   : > { %s2112_s15 = smov %s1617_s16  ;;  %21 = sbr.rel (!%p19_p4) target bundleno = 10 (0xa), region = 115 }
 0x58d   : > { %s2113_s16 = smov %s2108_s25 }
 0x591   :  { %1109 = vsyncpa [#allocation9], 1 }
 0x592   :  { %1111 = vsyncpa [#allocation9 + $0x1], 1 }
 0x593   :  { %1112 = vsyncpa [#allocation12], 1 }
 0x594   :  { %1114 = vsyncpa [#allocation12 + $0x1], 1 }
 0x595   :  { %1115 = vsyncpa [#allocation10], 1 }
 0x596   :  { %1117 = vsyncpa [#allocation10 + $0x1], 1 }

</bundles_post_ra>
